<compile_context>
chip_gen: v6e
topology: v6e:2x2x1
jax: 0.10.0
libtpu: 0.0.40
codegen_flags: <defaults>
</compile_context>

<pallas_src>
import jax
import jax.numpy as jnp
from jax.experimental import pallas as pl
from jax.experimental.pallas import tpu as pltpu


def _round_up(n, m):
    return (n + m - 1) // m * m


def _cdiv(a, b):
    return -(-a // b)


def _tpu_vmem_capacity_bytes():
    """Per-core VMEM capacity; conservative 64 MiB (v7x) fallback."""
    try:
        cap = int(pltpu.get_tpu_info().vmem_capacity_bytes)
        if cap > 0:
            return cap
    except Exception:
        pass
    return 64 << 20


def _rec_vmem_bytes(U, TB, Ip, Hp, Op):
    """Rough VMEM residency of the fused kernel (double-buffer accounting)."""
    G = 4 * Hp
    weights = 2 * (Ip * G + Hp * G + Hp * Op) * 2      # bf16 weights, x2 buffers
    biases = 2 * (G + Op) * 4
    x_stream = 2 * U * TB * Ip * 2                     # double-buffered bf16 x tile
    xproj = U * TB * G * 4                             # live f32 projection
    gates = 2 * TB * G * 4                             # per-step gates + slop
    hc = 2 * TB * Hp * 4
    out = 2 * TB * Op * 4
    return weights + biases + x_stream + xproj + gates + hc + out


def _pick_batch_tile(B):
    # <=256 rows per tile; if one block would cover a large batch, split in
    # two so v7x's second TensorCore gets work.  Small batches stay in one
    # block (splitting only adds serial grid steps on 1-TC chips).
    nb = _cdiv(B, 256)
    if nb == 1 and B >= 128:
        nb = 2
    return _round_up(_cdiv(B, nb), 8)


def _pick_seq_block(S, TB, Ip, Hp, Op, budget):
    """Largest U whose VMEM footprint fits and whose masked tail is small."""
    best = 1
    for cand in (32, 16, 8, 4, 2, 1):
        if cand > max(S, 8):
            continue
        if _rec_vmem_bytes(cand, TB, Ip, Hp, Op) > budget:
            continue
        if best == 1:
            best = cand                       # largest fitting, as fallback
        waste = _round_up(S, cand) - S        # masked tail timesteps
        if waste * 2 <= cand:
            return cand
    return best


def _vmem_limit(resident_bytes, capacity):
    want = resident_bytes * 3 // 2 + (2 << 20)
    cap = capacity * 7 // 8                   # leave headroom for compiler scratch
    return int(min(max(want, 16 << 20), cap))


# ---------------------------------------------------------------------------
# Fused kernel: input projection + LSTM recurrence + final fc
# grid = (batch_blocks ["parallel"], seq_blocks ["arbitrary"])
# ---------------------------------------------------------------------------
def _make_lstm_kernel(S, U, Hp):
    def kernel(x_ref, wih_ref, b_ref, whh_ref, wfc_ref, bfc_ref,
               out_ref, h_scr, c_scr):
        # x_ref:   (1, U*TB, Ip)  bf16  streamed (double-buffered)
        # wih_ref: (Ip, 4*Hp)     bf16  resident
        # b_ref:   (1, 4*Hp)      f32   (b_ih + b_hh)
        # whh_ref: (Hp, 4*Hp)     bf16  resident
        # wfc_ref: (Hp, Op)       bf16  resident
        # bfc_ref: (1, Op)        f32
        # out_ref: (TB, Op)       f32   written once, on the last seq block
        # h_scr/c_scr: (TB, Hp)   f32   carried across seq blocks
        t = pl.program_id(1)
        TB = h_scr.shape[0]

        @pl.when(t == 0)
        def _():
            h_scr[...] = jnp.zeros_like(h_scr)
            c_scr[...] = jnp.zeros_like(c_scr)

        # Fused input projection for all U timesteps of this block: one large
        # MXU matmul (full M occupancy), independent of the recurrence so the
        # scheduler can overlap it with the recurrent chain.
        x_proj = (
            jnp.dot(x_ref[0], wih_ref[...], preferred_element_type=jnp.float32)
            + b_ref[...]
        )                                                   # (U*TB, 4*Hp) f32

        h = h_scr[...]
        c = c_scr[...]
        # Static (unrolled) loop: gives the scheduler visibility across the
        # U recurrent steps processed inside one grid step.
        for u in range(U):
            gates = (
                x_proj[u * TB:(u + 1) * TB, :]
                + jnp.dot(h.astype(jnp.bfloat16), whh_ref[...],
                          preferred_element_type=jnp.float32)
            )                                               # (TB, 4*Hp)
            # Lane-aligned gate slices (Hp multiple of 128), PyTorch [i,f,g,o].
            i_g = jax.nn.sigmoid(gates[:, 0 * Hp:1 * Hp])
            f_g = jax.nn.sigmoid(gates[:, 1 * Hp:2 * Hp])
            g_g = jnp.tanh(gates[:, 2 * Hp:3 * Hp])
            o_g = jax.nn.sigmoid(gates[:, 3 * Hp:4 * Hp])
            c_new = f_g * c + i_g * g_g
            h_new = o_g * jnp.tanh(c_new)
            if S % U == 0:
                h, c = h_new, c_new
            else:
                # Masked tail timestep: keep h/c unchanged past the true
                # sequence length instead of shrinking U (avoids the slow
                # U=1 fallback). A few predicated VPU selects only.
                valid = (t * U + u) < S
                h = jnp.where(valid, h_new, h)
                c = jnp.where(valid, c_new, c)
        h_scr[...] = h
        c_scr[...] = c

        @pl.when(t == pl.num_programs(1) - 1)
        def _():
            out_ref[...] = (
                jnp.dot(h.astype(jnp.bfloat16), wfc_ref[...],
                        preferred_element_type=jnp.float32)
                + bfc_ref[...]
            )

    return kernel


def rnn_forward(x, params):
    """x: (batch, seq, input_size) float32 -> (batch, output_size) float32."""
    w_ih, w_hh, b_ih, b_hh, w_fc, b_fc = params
    B, S, I = x.shape
    H = w_hh.shape[1]
    O = w_fc.shape[0]

    f32, bf16 = jnp.float32, jnp.bfloat16

    # --- lane/sublane-aligned padded sizes ---------------------------------
    Ip = _round_up(I, 128)
    Hp = _round_up(H, 128)                       # per-gate lane-aligned block
    Op = _round_up(O, 128)

    capacity = _tpu_vmem_capacity_bytes()
    TB = _pick_batch_tile(B)
    U = _pick_seq_block(S, TB, Ip, Hp, Op, capacity // 2)
    Bp = _round_up(B, TB)
    Sp = _round_up(S, U)
    NB = Bp // TB

    # --- glue: time-major bf16 x, gate-blocked & zero-padded bf16 weights --
    x_tm = jnp.transpose(x, (1, 0, 2)).astype(bf16)                 # (S, B, I)
    x_p = jnp.zeros((Sp, Bp, Ip), bf16).at[:S, :B, :I].set(x_tm)
    # Group by batch block, time-major rows within each block, so the kernel
    # streams a clean lane-dense 2D (U*TB, Ip) slab per grid step.
    x_g = (x_p.reshape(Sp, NB, TB, Ip)
           .transpose(1, 0, 2, 3)
           .reshape(NB, Sp * TB, Ip))

    wih_t = (jnp.zeros((Ip, 4, Hp), bf16)
             .at[:I, :, :H]
             .set(jnp.transpose(w_ih.reshape(4, H, I), (2, 0, 1)).astype(bf16))
             .reshape(Ip, 4 * Hp))
    whh_t = (jnp.zeros((Hp, 4, Hp), bf16)
             .at[:H, :, :H]
             .set(jnp.transpose(w_hh.reshape(4, H, H), (2, 0, 1)).astype(bf16))
             .reshape(Hp, 4 * Hp))
    b = (jnp.zeros((1, 4, Hp), f32)
         .at[0, :, :H].set((b_ih + b_hh).reshape(4, H))
         .reshape(1, 4 * Hp))
    wfc_t = jnp.zeros((Hp, Op), bf16).at[:H, :O].set(
        jnp.transpose(w_fc).astype(bf16))
    bfc = jnp.zeros((1, Op), f32).at[0, :O].set(b_fc.astype(f32))

    # TODO(synk): for very large input_size (Ip*4*Hp*2 bytes approaching the
    # VMEM budget) W_ih needs a K-tiled third grid axis; it is kept fully
    # resident here.

    rec_bytes = _rec_vmem_bytes(U, TB, Ip, Hp, Op)
    out_p = pl.pallas_call(
        _make_lstm_kernel(S, U, Hp),
        out_shape=jax.ShapeDtypeStruct((Bp, Op), f32),
        grid_spec=pltpu.PrefetchScalarGridSpec(
            num_scalar_prefetch=0,
            grid=(NB, Sp // U),
            in_specs=[
                pl.BlockSpec((1, U * TB, Ip), lambda bb, t: (bb, t, 0)),
                pl.BlockSpec((Ip, 4 * Hp), lambda bb, t: (0, 0)),
                pl.BlockSpec((1, 4 * Hp), lambda bb, t: (0, 0)),
                pl.BlockSpec((Hp, 4 * Hp), lambda bb, t: (0, 0)),
                pl.BlockSpec((Hp, Op), lambda bb, t: (0, 0)),
                pl.BlockSpec((1, Op), lambda bb, t: (0, 0)),
            ],
            out_specs=pl.BlockSpec((TB, Op), lambda bb, t: (bb, 0)),
            scratch_shapes=[pltpu.VMEM((TB, Hp), f32),
                            pltpu.VMEM((TB, Hp), f32)],
        ),
        compiler_params=pltpu.CompilerParams(
            dimension_semantics=("parallel", "arbitrary"),
            vmem_limit_bytes=_vmem_limit(rec_bytes, capacity)),
    )(x_g, wih_t, b, whh_t, wfc_t, bfc)

    return out_p[:B, :O]


def init_params(key, input_size, hidden_size, output_size):
    """Deterministic PyTorch-style uniform(-1/sqrt(H), 1/sqrt(H)) init."""
    ks = jax.random.split(key, 6)
    k_lstm = 1.0 / jnp.sqrt(hidden_size)
    k_fc = 1.0 / jnp.sqrt(hidden_size)
    w_ih = jax.random.uniform(ks[0], (4 * hidden_size, input_size),
                              minval=-k_lstm, maxval=k_lstm, dtype=jnp.float32)
    w_hh = jax.random.uniform(ks[1], (4 * hidden_size, hidden_size),
                              minval=-k_lstm, maxval=k_lstm, dtype=jnp.float32)
    b_ih = jax.random.uniform(ks[2], (4 * hidden_size,),
                              minval=-k_lstm, maxval=k_lstm, dtype=jnp.float32)
    b_hh = jax.random.uniform(ks[3], (4 * hidden_size,),
                              minval=-k_lstm, maxval=k_lstm, dtype=jnp.float32)
    w_fc = jax.random.uniform(ks[4], (output_size, hidden_size),
                              minval=-k_fc, maxval=k_fc, dtype=jnp.float32)
    b_fc = jax.random.uniform(ks[5], (output_size,),
                              minval=-k_fc, maxval=k_fc, dtype=jnp.float32)
    return (w_ih, w_hh, b_ih, b_hh, w_fc, b_fc)


def rnn_reference(x, params, *, mirror_bf16=True):
    """Pure-JAX reference. mirror_bf16=True mirrors the kernel's numeric recipe
    (bf16 matmul operands, f32 accumulation & elementwise)."""
    w_ih, w_hh, b_ih, b_hh, w_fc, b_fc = params
    B, S, I = x.shape
    H = w_hh.shape[1]
    dt = jnp.bfloat16 if mirror_bf16 else jnp.float32

    x_tm = jnp.transpose(x, (1, 0, 2)).astype(dt)
    wih_t = jnp.transpose(w_ih).astype(dt)
    whh_t = jnp.transpose(w_hh).astype(dt)
    wfc_t = jnp.transpose(w_fc).astype(dt)
    bias = (b_ih + b_hh)[None, :].astype(jnp.float32)

    x_proj = jnp.einsum("sbi,ig->sbg", x_tm, wih_t,
                        preferred_element_type=jnp.float32) + bias
    h = jnp.zeros((B, H), jnp.float32)
    c = jnp.zeros((B, H), jnp.float32)
    for t in range(S):
        gates = x_proj[t] + jnp.dot(h.astype(dt), whh_t,
                                    preferred_element_type=jnp.float32)
        i_g = jax.nn.sigmoid(gates[:, 0 * H:1 * H])
        f_g = jax.nn.sigmoid(gates[:, 1 * H:2 * H])
        g_g = jnp.tanh(gates[:, 2 * H:3 * H])
        o_g = jax.nn.sigmoid(gates[:, 3 * H:4 * H])
        c = f_g * c + i_g * g_g
        h = o_g * jnp.tanh(c)
    return jnp.dot(h.astype(dt), wfc_t,
                   preferred_element_type=jnp.float32) + b_fc[None, :]


if __name__ == "__main__":
    batch, seq, input_size, hidden_size, output_size = 2, 8, 16, 32, 8

    key = jax.random.PRNGKey(0)
    k_x, k_p = jax.random.split(key)
    x = jax.random.normal(k_x, (batch, seq, input_size), dtype=jnp.float32)
    params = init_params(k_p, input_size, hidden_size, output_size)

    out = jax.block_until_ready(rnn_forward(x, params))
    assert out.shape == (batch, output_size)

    # Tight check against a reference that mirrors the kernel's bf16/f32 recipe.
    ref_bf16 = rnn_reference(x, params, mirror_bf16=True)
    assert jnp.allclose(out, ref_bf16, atol=1e-4, rtol=1e-4), \
        float(jnp.max(jnp.abs(out - ref_bf16)))

    # Loose sanity check against the pure-f32 reference (bf16 rounding budget).
    ref_f32 = rnn_reference(x, params, mirror_bf16=False)
    assert jnp.allclose(out, ref_f32, atol=5e-2), \
        float(jnp.max(jnp.abs(out - ref_f32)))

    print("KERNEL_OK")
</pallas_src>

<mosaic_0001>
module attributes {stable_mosaic.version = 11 : i64} {
  func.func @kernel(%arg0: i32, %arg1: i32, %arg2: memref<1x64x128xbf16, #tpu.memory_space<vmem>>, %arg3: memref<128x512xbf16, #tpu.memory_space<vmem>>, %arg4: memref<1x512xf32, #tpu.memory_space<vmem>>, %arg5: memref<128x512xbf16, #tpu.memory_space<vmem>>, %arg6: memref<128x128xbf16, #tpu.memory_space<vmem>>, %arg7: memref<1x128xf32, #tpu.memory_space<vmem>>, %arg8: memref<8x128xf32, #tpu.memory_space<vmem>>, %arg9: memref<8x128xf32, #tpu.memory_space<vmem>>, %arg10: memref<8x128xf32, #tpu.memory_space<vmem>>) attributes {dimension_semantics = [#tpu.dimension_semantics<parallel>, #tpu.dimension_semantics<arbitrary>], iteration_bounds = array<i64: 1, 1>, scalar_prefetch = 0 : i64, scratch_operands = 2 : i64, tpu.core_type = #tpu.core_type<tc>, window_params = [{transform_indices = @transform_0, window_bounds = array<i64: 1, 64, 128>}, {pipeline_mode = #tpu.pipeline_mode<synchronous>, transform_indices = @transform_1, window_bounds = array<i64: 128, 512>}, {pipeline_mode = #tpu.pipeline_mode<synchronous>, transform_indices = @transform_2, window_bounds = array<i64: 1, 512>}, {pipeline_mode = #tpu.pipeline_mode<synchronous>, transform_indices = @transform_3, window_bounds = array<i64: 128, 512>}, {pipeline_mode = #tpu.pipeline_mode<synchronous>, transform_indices = @transform_4, window_bounds = array<i64: 128, 128>}, {pipeline_mode = #tpu.pipeline_mode<synchronous>, transform_indices = @transform_5, window_bounds = array<i64: 1, 128>}, {transform_indices = @transform_6, window_bounds = array<i64: 8, 128>}]} {
    %c0_i32 = arith.constant 0 : i32
    %0 = arith.cmpi eq, %arg1, %c0_i32 : i32
    %1 = arith.extui %0 : i1 to i32
    %c0_i32_0 = arith.constant 0 : i32
    %2 = arith.cmpi ne, %1, %c0_i32_0 : i32
    scf.if %2 {
      %cst_65 = arith.constant 0.000000e+00 : f32
      %257 = vector.broadcast %cst_65 : f32 to vector<8x128xf32>
      %c0_66 = arith.constant 0 : index
      %c0_67 = arith.constant 0 : index
      %258 = vector.load %arg9[%c0_66, %c0_67] : memref<8x128xf32, #tpu.memory_space<vmem>>, vector<8x128xf32>
      tpu.vector_store %arg9[%c0_66, %c0_67], %257 {strides = array<i32>} : memref<8x128xf32, #tpu.memory_space<vmem>>, vector<8x128xf32>,
      %cst_68 = arith.constant 0.000000e+00 : f32
      %259 = vector.broadcast %cst_68 : f32 to vector<8x128xf32>
      %c0_69 = arith.constant 0 : index
      %c0_70 = arith.constant 0 : index
      %260 = vector.load %arg10[%c0_69, %c0_70] : memref<8x128xf32, #tpu.memory_space<vmem>>, vector<8x128xf32>
      tpu.vector_store %arg10[%c0_69, %c0_70], %259 {strides = array<i32>} : memref<8x128xf32, #tpu.memory_space<vmem>>, vector<8x128xf32>,
    } else {
    }
    %c0 = arith.constant 0 : index
    %c0_1 = arith.constant 0 : index
    %c0_2 = arith.constant 0 : index
    %3 = vector.load %arg2[%c0, %c0_1, %c0_2] : memref<1x64x128xbf16, #tpu.memory_space<vmem>>, vector<1x64x128xbf16>
    %4 = vector.shape_cast %3 : vector<1x64x128xbf16> to vector<64x128xbf16>
    %c0_3 = arith.constant 0 : index
    %c0_4 = arith.constant 0 : index
    %5 = vector.load %arg3[%c0_3, %c0_4] : memref<128x512xbf16, #tpu.memory_space<vmem>>, vector<128x512xbf16>
    %cst = arith.constant dense<0.000000e+00> : vector<64x512xf32>
    %6 = tpu.matmul %4, %5, %cst {dimension_numbers = #tpu.dot_dimension_numbers<[1], [0], [0], [1], [0, 0, 1, 1], [], []>} : vector<64x128xbf16>, vector<128x512xbf16>, vector<64x512xf32> -> vector<64x512xf32>
    %c0_5 = arith.constant 0 : index
    %c0_6 = arith.constant 0 : index
    %7 = vector.load %arg4[%c0_5, %c0_6] : memref<1x512xf32, #tpu.memory_space<vmem>>, vector<1x512xf32>
    %8 = vector.broadcast %7 : vector<1x512xf32> to vector<64x512xf32>
    %9 = arith.addf %6, %8 : vector<64x512xf32>
    %c0_7 = arith.constant 0 : index
    %c0_8 = arith.constant 0 : index
    %10 = vector.load %arg9[%c0_7, %c0_8] : memref<8x128xf32, #tpu.memory_space<vmem>>, vector<8x128xf32>
    %c0_9 = arith.constant 0 : index
    %c0_10 = arith.constant 0 : index
    %11 = vector.load %arg10[%c0_9, %c0_10] : memref<8x128xf32, #tpu.memory_space<vmem>>, vector<8x128xf32>
    %12 = vector.extract_strided_slice %9 {offsets = [0, 0], sizes = [8, 512], strides = [1, 1]} : vector<64x512xf32> to vector<8x512xf32>
    %13 = arith.truncf %10 : vector<8x128xf32> to vector<8x128xbf16>
    %c0_11 = arith.constant 0 : index
    %c0_12 = arith.constant 0 : index
    %14 = vector.load %arg5[%c0_11, %c0_12] : memref<128x512xbf16, #tpu.memory_space<vmem>>, vector<128x512xbf16>
    %cst_13 = arith.constant dense<0.000000e+00> : vector<8x512xf32>
    %15 = tpu.matmul %13, %14, %cst_13 {dimension_numbers = #tpu.dot_dimension_numbers<[1], [0], [0], [1], [0, 0, 1, 1], [], []>} : vector<8x128xbf16>, vector<128x512xbf16>, vector<8x512xf32> -> vector<8x512xf32>
    %16 = arith.addf %12, %15 : vector<8x512xf32>
    %17 = vector.extract_strided_slice %16 {offsets = [0, 0], sizes = [8, 128], strides = [1, 1]} : vector<8x512xf32> to vector<8x128xf32>
    %18 = arith.negf %17 : vector<8x128xf32>
    %19 = math.exp %18 : vector<8x128xf32>
    %cst_14 = arith.constant 1.000000e+00 : f32
    %20 = vector.broadcast %cst_14 : f32 to vector<8x128xf32>
    %21 = arith.addf %20, %19 : vector<8x128xf32>
    %22 = arith.divf %20, %21 : vector<8x128xf32>
    %23 = vector.extract_strided_slice %16 {offsets = [0, 128], sizes = [8, 128], strides = [1, 1]} : vector<8x512xf32> to vector<8x128xf32>
    %24 = arith.negf %23 : vector<8x128xf32>
    %25 = math.exp %24 : vector<8x128xf32>
    %cst_15 = arith.constant 1.000000e+00 : f32
    %26 = vector.broadcast %cst_15 : f32 to vector<8x128xf32>
    %27 = arith.addf %26, %25 : vector<8x128xf32>
    %28 = arith.divf %26, %27 : vector<8x128xf32>
    %29 = vector.extract_strided_slice %16 {offsets = [0, 256], sizes = [8, 128], strides = [1, 1]} : vector<8x512xf32> to vector<8x128xf32>
    %30 = math.tanh %29 : vector<8x128xf32>
    %31 = vector.extract_strided_slice %16 {offsets = [0, 384], sizes = [8, 128], strides = [1, 1]} : vector<8x512xf32> to vector<8x128xf32>
    %32 = arith.negf %31 : vector<8x128xf32>
    %33 = math.exp %32 : vector<8x128xf32>
    %cst_16 = arith.constant 1.000000e+00 : f32
    %34 = vector.broadcast %cst_16 : f32 to vector<8x128xf32>
    %35 = arith.addf %34, %33 : vector<8x128xf32>
    %36 = arith.divf %34, %35 : vector<8x128xf32>
    %37 = arith.mulf %28, %11 : vector<8x128xf32>
    %38 = arith.mulf %22, %30 : vector<8x128xf32>
    %39 = arith.addf %37, %38 : vector<8x128xf32>
    %40 = math.tanh %39 : vector<8x128xf32>
    %41 = arith.mulf %36, %40 : vector<8x128xf32>
    %42 = vector.extract_strided_slice %9 {offsets = [8, 0], sizes = [8, 512], strides = [1, 1]} : vector<64x512xf32> to vector<8x512xf32>
    %43 = arith.truncf %41 : vector<8x128xf32> to vector<8x128xbf16>
    %c0_17 = arith.constant 0 : index
    %c0_18 = arith.constant 0 : index
    %44 = vector.load %arg5[%c0_17, %c0_18] : memref<128x512xbf16, #tpu.memory_space<vmem>>, vector<128x512xbf16>
    %cst_19 = arith.constant dense<0.000000e+00> : vector<8x512xf32>
    %45 = tpu.matmul %43, %44, %cst_19 {dimension_numbers = #tpu.dot_dimension_numbers<[1], [0], [0], [1], [0, 0, 1, 1], [], []>} : vector<8x128xbf16>, vector<128x512xbf16>, vector<8x512xf32> -> vector<8x512xf32>
    %46 = arith.addf %42, %45 : vector<8x512xf32>
    %47 = vector.extract_strided_slice %46 {offsets = [0, 0], sizes = [8, 128], strides = [1, 1]} : vector<8x512xf32> to vector<8x128xf32>
    %48 = arith.negf %47 : vector<8x128xf32>
    %49 = math.exp %48 : vector<8x128xf32>
    %cst_20 = arith.constant 1.000000e+00 : f32
    %50 = vector.broadcast %cst_20 : f32 to vector<8x128xf32>
    %51 = arith.addf %50, %49 : vector<8x128xf32>
    %52 = arith.divf %50, %51 : vector<8x128xf32>
    %53 = vector.extract_strided_slice %46 {offsets = [0, 128], sizes = [8, 128], strides = [1, 1]} : vector<8x512xf32> to vector<8x128xf32>
    %54 = arith.negf %53 : vector<8x128xf32>
    %55 = math.exp %54 : vector<8x128xf32>
    %cst_21 = arith.constant 1.000000e+00 : f32
    %56 = vector.broadcast %cst_21 : f32 to vector<8x128xf32>
    %57 = arith.addf %56, %55 : vector<8x128xf32>
    %58 = arith.divf %56, %57 : vector<8x128xf32>
    %59 = vector.extract_strided_slice %46 {offsets = [0, 256], sizes = [8, 128], strides = [1, 1]} : vector<8x512xf32> to vector<8x128xf32>
    %60 = math.tanh %59 : vector<8x128xf32>
    %61 = vector.extract_strided_slice %46 {offsets = [0, 384], sizes = [8, 128], strides = [1, 1]} : vector<8x512xf32> to vector<8x128xf32>
    %62 = arith.negf %61 : vector<8x128xf32>
    %63 = math.exp %62 : vector<8x128xf32>
    %cst_22 = arith.constant 1.000000e+00 : f32
    %64 = vector.broadcast %cst_22 : f32 to vector<8x128xf32>
    %65 = arith.addf %64, %63 : vector<8x128xf32>
    %66 = arith.divf %64, %65 : vector<8x128xf32>
    %67 = arith.mulf %58, %39 : vector<8x128xf32>
    %68 = arith.mulf %52, %60 : vector<8x128xf32>
    %69 = arith.addf %67, %68 : vector<8x128xf32>
    %70 = math.tanh %69 : vector<8x128xf32>
    %71 = arith.mulf %66, %70 : vector<8x128xf32>
    %72 = vector.extract_strided_slice %9 {offsets = [16, 0], sizes = [8, 512], strides = [1, 1]} : vector<64x512xf32> to vector<8x512xf32>
    %73 = arith.truncf %71 : vector<8x128xf32> to vector<8x128xbf16>
    %c0_23 = arith.constant 0 : index
    %c0_24 = arith.constant 0 : index
    %74 = vector.load %arg5[%c0_23, %c0_24] : memref<128x512xbf16, #tpu.memory_space<vmem>>, vector<128x512xbf16>
    %cst_25 = arith.constant dense<0.000000e+00> : vector<8x512xf32>
    %75 = tpu.matmul %73, %74, %cst_25 {dimension_numbers = #tpu.dot_dimension_numbers<[1], [0], [0], [1], [0, 0, 1, 1], [], []>} : vector<8x128xbf16>, vector<128x512xbf16>, vector<8x512xf32> -> vector<8x512xf32>
    %76 = arith.addf %72, %75 : vector<8x512xf32>
    %77 = vector.extract_strided_slice %76 {offsets = [0, 0], sizes = [8, 128], strides = [1, 1]} : vector<8x512xf32> to vector<8x128xf32>
    %78 = arith.negf %77 : vector<8x128xf32>
    %79 = math.exp %78 : vector<8x128xf32>
    %cst_26 = arith.constant 1.000000e+00 : f32
    %80 = vector.broadcast %cst_26 : f32 to vector<8x128xf32>
    %81 = arith.addf %80, %79 : vector<8x128xf32>
    %82 = arith.divf %80, %81 : vector<8x128xf32>
    %83 = vector.extract_strided_slice %76 {offsets = [0, 128], sizes = [8, 128], strides = [1, 1]} : vector<8x512xf32> to vector<8x128xf32>
    %84 = arith.negf %83 : vector<8x128xf32>
    %85 = math.exp %84 : vector<8x128xf32>
    %cst_27 = arith.constant 1.000000e+00 : f32
    %86 = vector.broadcast %cst_27 : f32 to vector<8x128xf32>
    %87 = arith.addf %86, %85 : vector<8x128xf32>
    %88 = arith.divf %86, %87 : vector<8x128xf32>
    %89 = vector.extract_strided_slice %76 {offsets = [0, 256], sizes = [8, 128], strides = [1, 1]} : vector<8x512xf32> to vector<8x128xf32>
    %90 = math.tanh %89 : vector<8x128xf32>
    %91 = vector.extract_strided_slice %76 {offsets = [0, 384], sizes = [8, 128], strides = [1, 1]} : vector<8x512xf32> to vector<8x128xf32>
    %92 = arith.negf %91 : vector<8x128xf32>
    %93 = math.exp %92 : vector<8x128xf32>
    %cst_28 = arith.constant 1.000000e+00 : f32
    %94 = vector.broadcast %cst_28 : f32 to vector<8x128xf32>
    %95 = arith.addf %94, %93 : vector<8x128xf32>
    %96 = arith.divf %94, %95 : vector<8x128xf32>
    %97 = arith.mulf %88, %69 : vector<8x128xf32>
    %98 = arith.mulf %82, %90 : vector<8x128xf32>
    %99 = arith.addf %97, %98 : vector<8x128xf32>
    %100 = math.tanh %99 : vector<8x128xf32>
    %101 = arith.mulf %96, %100 : vector<8x128xf32>
    %102 = vector.extract_strided_slice %9 {offsets = [24, 0], sizes = [8, 512], strides = [1, 1]} : vector<64x512xf32> to vector<8x512xf32>
    %103 = arith.truncf %101 : vector<8x128xf32> to vector<8x128xbf16>
    %c0_29 = arith.constant 0 : index
    %c0_30 = arith.constant 0 : index
    %104 = vector.load %arg5[%c0_29, %c0_30] : memref<128x512xbf16, #tpu.memory_space<vmem>>, vector<128x512xbf16>
    %cst_31 = arith.constant dense<0.000000e+00> : vector<8x512xf32>
    %105 = tpu.matmul %103, %104, %cst_31 {dimension_numbers = #tpu.dot_dimension_numbers<[1], [0], [0], [1], [0, 0, 1, 1], [], []>} : vector<8x128xbf16>, vector<128x512xbf16>, vector<8x512xf32> -> vector<8x512xf32>
    %106 = arith.addf %102, %105 : vector<8x512xf32>
    %107 = vector.extract_strided_slice %106 {offsets = [0, 0], sizes = [8, 128], strides = [1, 1]} : vector<8x512xf32> to vector<8x128xf32>
    %108 = arith.negf %107 : vector<8x128xf32>
    %109 = math.exp %108 : vector<8x128xf32>
    %cst_32 = arith.constant 1.000000e+00 : f32
    %110 = vector.broadcast %cst_32 : f32 to vector<8x128xf32>
    %111 = arith.addf %110, %109 : vector<8x128xf32>
    %112 = arith.divf %110, %111 : vector<8x128xf32>
    %113 = vector.extract_strided_slice %106 {offsets = [0, 128], sizes = [8, 128], strides = [1, 1]} : vector<8x512xf32> to vector<8x128xf32>
    %114 = arith.negf %113 : vector<8x128xf32>
    %115 = math.exp %114 : vector<8x128xf32>
    %cst_33 = arith.constant 1.000000e+00 : f32
    %116 = vector.broadcast %cst_33 : f32 to vector<8x128xf32>
    %117 = arith.addf %116, %115 : vector<8x128xf32>
    %118 = arith.divf %116, %117 : vector<8x128xf32>
    %119 = vector.extract_strided_slice %106 {offsets = [0, 256], sizes = [8, 128], strides = [1, 1]} : vector<8x512xf32> to vector<8x128xf32>
    %120 = math.tanh %119 : vector<8x128xf32>
    %121 = vector.extract_strided_slice %106 {offsets = [0, 384], sizes = [8, 128], strides = [1, 1]} : vector<8x512xf32> to vector<8x128xf32>
    %122 = arith.negf %121 : vector<8x128xf32>
    %123 = math.exp %122 : vector<8x128xf32>
    %cst_34 = arith.constant 1.000000e+00 : f32
    %124 = vector.broadcast %cst_34 : f32 to vector<8x128xf32>
    %125 = arith.addf %124, %123 : vector<8x128xf32>
    %126 = arith.divf %124, %125 : vector<8x128xf32>
    %127 = arith.mulf %118, %99 : vector<8x128xf32>
    %128 = arith.mulf %112, %120 : vector<8x128xf32>
    %129 = arith.addf %127, %128 : vector<8x128xf32>
    %130 = math.tanh %129 : vector<8x128xf32>
    %131 = arith.mulf %126, %130 : vector<8x128xf32>
    %132 = vector.extract_strided_slice %9 {offsets = [32, 0], sizes = [8, 512], strides = [1, 1]} : vector<64x512xf32> to vector<8x512xf32>
    %133 = arith.truncf %131 : vector<8x128xf32> to vector<8x128xbf16>
    %c0_35 = arith.constant 0 : index
    %c0_36 = arith.constant 0 : index
    %134 = vector.load %arg5[%c0_35, %c0_36] : memref<128x512xbf16, #tpu.memory_space<vmem>>, vector<128x512xbf16>
    %cst_37 = arith.constant dense<0.000000e+00> : vector<8x512xf32>
    %135 = tpu.matmul %133, %134, %cst_37 {dimension_numbers = #tpu.dot_dimension_numbers<[1], [0], [0], [1], [0, 0, 1, 1], [], []>} : vector<8x128xbf16>, vector<128x512xbf16>, vector<8x512xf32> -> vector<8x512xf32>
    %136 = arith.addf %132, %135 : vector<8x512xf32>
    %137 = vector.extract_strided_slice %136 {offsets = [0, 0], sizes = [8, 128], strides = [1, 1]} : vector<8x512xf32> to vector<8x128xf32>
    %138 = arith.negf %137 : vector<8x128xf32>
    %139 = math.exp %138 : vector<8x128xf32>
    %cst_38 = arith.constant 1.000000e+00 : f32
    %140 = vector.broadcast %cst_38 : f32 to vector<8x128xf32>
    %141 = arith.addf %140, %139 : vector<8x128xf32>
    %142 = arith.divf %140, %141 : vector<8x128xf32>
    %143 = vector.extract_strided_slice %136 {offsets = [0, 128], sizes = [8, 128], strides = [1, 1]} : vector<8x512xf32> to vector<8x128xf32>
    %144 = arith.negf %143 : vector<8x128xf32>
    %145 = math.exp %144 : vector<8x128xf32>
    %cst_39 = arith.constant 1.000000e+00 : f32
    %146 = vector.broadcast %cst_39 : f32 to vector<8x128xf32>
    %147 = arith.addf %146, %145 : vector<8x128xf32>
    %148 = arith.divf %146, %147 : vector<8x128xf32>
    %149 = vector.extract_strided_slice %136 {offsets = [0, 256], sizes = [8, 128], strides = [1, 1]} : vector<8x512xf32> to vector<8x128xf32>
    %150 = math.tanh %149 : vector<8x128xf32>
    %151 = vector.extract_strided_slice %136 {offsets = [0, 384], sizes = [8, 128], strides = [1, 1]} : vector<8x512xf32> to vector<8x128xf32>
    %152 = arith.negf %151 : vector<8x128xf32>
    %153 = math.exp %152 : vector<8x128xf32>
    %cst_40 = arith.constant 1.000000e+00 : f32
    %154 = vector.broadcast %cst_40 : f32 to vector<8x128xf32>
    %155 = arith.addf %154, %153 : vector<8x128xf32>
    %156 = arith.divf %154, %155 : vector<8x128xf32>
    %157 = arith.mulf %148, %129 : vector<8x128xf32>
    %158 = arith.mulf %142, %150 : vector<8x128xf32>
    %159 = arith.addf %157, %158 : vector<8x128xf32>
    %160 = math.tanh %159 : vector<8x128xf32>
    %161 = arith.mulf %156, %160 : vector<8x128xf32>
    %162 = vector.extract_strided_slice %9 {offsets = [40, 0], sizes = [8, 512], strides = [1, 1]} : vector<64x512xf32> to vector<8x512xf32>
    %163 = arith.truncf %161 : vector<8x128xf32> to vector<8x128xbf16>
    %c0_41 = arith.constant 0 : index
    %c0_42 = arith.constant 0 : index
    %164 = vector.load %arg5[%c0_41, %c0_42] : memref<128x512xbf16, #tpu.memory_space<vmem>>, vector<128x512xbf16>
    %cst_43 = arith.constant dense<0.000000e+00> : vector<8x512xf32>
    %165 = tpu.matmul %163, %164, %cst_43 {dimension_numbers = #tpu.dot_dimension_numbers<[1], [0], [0], [1], [0, 0, 1, 1], [], []>} : vector<8x128xbf16>, vector<128x512xbf16>, vector<8x512xf32> -> vector<8x512xf32>
    %166 = arith.addf %162, %165 : vector<8x512xf32>
    %167 = vector.extract_strided_slice %166 {offsets = [0, 0], sizes = [8, 128], strides = [1, 1]} : vector<8x512xf32> to vector<8x128xf32>
    %168 = arith.negf %167 : vector<8x128xf32>
    %169 = math.exp %168 : vector<8x128xf32>
    %cst_44 = arith.constant 1.000000e+00 : f32
    %170 = vector.broadcast %cst_44 : f32 to vector<8x128xf32>
    %171 = arith.addf %170, %169 : vector<8x128xf32>
    %172 = arith.divf %170, %171 : vector<8x128xf32>
    %173 = vector.extract_strided_slice %166 {offsets = [0, 128], sizes = [8, 128], strides = [1, 1]} : vector<8x512xf32> to vector<8x128xf32>
    %174 = arith.negf %173 : vector<8x128xf32>
    %175 = math.exp %174 : vector<8x128xf32>
    %cst_45 = arith.constant 1.000000e+00 : f32
    %176 = vector.broadcast %cst_45 : f32 to vector<8x128xf32>
    %177 = arith.addf %176, %175 : vector<8x128xf32>
    %178 = arith.divf %176, %177 : vector<8x128xf32>
    %179 = vector.extract_strided_slice %166 {offsets = [0, 256], sizes = [8, 128], strides = [1, 1]} : vector<8x512xf32> to vector<8x128xf32>
    %180 = math.tanh %179 : vector<8x128xf32>
    %181 = vector.extract_strided_slice %166 {offsets = [0, 384], sizes = [8, 128], strides = [1, 1]} : vector<8x512xf32> to vector<8x128xf32>
    %182 = arith.negf %181 : vector<8x128xf32>
    %183 = math.exp %182 : vector<8x128xf32>
    %cst_46 = arith.constant 1.000000e+00 : f32
    %184 = vector.broadcast %cst_46 : f32 to vector<8x128xf32>
    %185 = arith.addf %184, %183 : vector<8x128xf32>
    %186 = arith.divf %184, %185 : vector<8x128xf32>
    %187 = arith.mulf %178, %159 : vector<8x128xf32>
    %188 = arith.mulf %172, %180 : vector<8x128xf32>
    %189 = arith.addf %187, %188 : vector<8x128xf32>
    %190 = math.tanh %189 : vector<8x128xf32>
    %191 = arith.mulf %186, %190 : vector<8x128xf32>
    %192 = vector.extract_strided_slice %9 {offsets = [48, 0], sizes = [8, 512], strides = [1, 1]} : vector<64x512xf32> to vector<8x512xf32>
    %193 = arith.truncf %191 : vector<8x128xf32> to vector<8x128xbf16>
    %c0_47 = arith.constant 0 : index
    %c0_48 = arith.constant 0 : index
    %194 = vector.load %arg5[%c0_47, %c0_48] : memref<128x512xbf16, #tpu.memory_space<vmem>>, vector<128x512xbf16>
    %cst_49 = arith.constant dense<0.000000e+00> : vector<8x512xf32>
    %195 = tpu.matmul %193, %194, %cst_49 {dimension_numbers = #tpu.dot_dimension_numbers<[1], [0], [0], [1], [0, 0, 1, 1], [], []>} : vector<8x128xbf16>, vector<128x512xbf16>, vector<8x512xf32> -> vector<8x512xf32>
    %196 = arith.addf %192, %195 : vector<8x512xf32>
    %197 = vector.extract_strided_slice %196 {offsets = [0, 0], sizes = [8, 128], strides = [1, 1]} : vector<8x512xf32> to vector<8x128xf32>
    %198 = arith.negf %197 : vector<8x128xf32>
    %199 = math.exp %198 : vector<8x128xf32>
    %cst_50 = arith.constant 1.000000e+00 : f32
    %200 = vector.broadcast %cst_50 : f32 to vector<8x128xf32>
    %201 = arith.addf %200, %199 : vector<8x128xf32>
    %202 = arith.divf %200, %201 : vector<8x128xf32>
    %203 = vector.extract_strided_slice %196 {offsets = [0, 128], sizes = [8, 128], strides = [1, 1]} : vector<8x512xf32> to vector<8x128xf32>
    %204 = arith.negf %203 : vector<8x128xf32>
    %205 = math.exp %204 : vector<8x128xf32>
    %cst_51 = arith.constant 1.000000e+00 : f32
    %206 = vector.broadcast %cst_51 : f32 to vector<8x128xf32>
    %207 = arith.addf %206, %205 : vector<8x128xf32>
    %208 = arith.divf %206, %207 : vector<8x128xf32>
    %209 = vector.extract_strided_slice %196 {offsets = [0, 256], sizes = [8, 128], strides = [1, 1]} : vector<8x512xf32> to vector<8x128xf32>
    %210 = math.tanh %209 : vector<8x128xf32>
    %211 = vector.extract_strided_slice %196 {offsets = [0, 384], sizes = [8, 128], strides = [1, 1]} : vector<8x512xf32> to vector<8x128xf32>
    %212 = arith.negf %211 : vector<8x128xf32>
    %213 = math.exp %212 : vector<8x128xf32>
    %cst_52 = arith.constant 1.000000e+00 : f32
    %214 = vector.broadcast %cst_52 : f32 to vector<8x128xf32>
    %215 = arith.addf %214, %213 : vector<8x128xf32>
    %216 = arith.divf %214, %215 : vector<8x128xf32>
    %217 = arith.mulf %208, %189 : vector<8x128xf32>
    %218 = arith.mulf %202, %210 : vector<8x128xf32>
    %219 = arith.addf %217, %218 : vector<8x128xf32>
    %220 = math.tanh %219 : vector<8x128xf32>
    %221 = arith.mulf %216, %220 : vector<8x128xf32>
    %222 = vector.extract_strided_slice %9 {offsets = [56, 0], sizes = [8, 512], strides = [1, 1]} : vector<64x512xf32> to vector<8x512xf32>
    %223 = arith.truncf %221 : vector<8x128xf32> to vector<8x128xbf16>
    %c0_53 = arith.constant 0 : index
    %c0_54 = arith.constant 0 : index
    %224 = vector.load %arg5[%c0_53, %c0_54] : memref<128x512xbf16, #tpu.memory_space<vmem>>, vector<128x512xbf16>
    %cst_55 = arith.constant dense<0.000000e+00> : vector<8x512xf32>
    %225 = tpu.matmul %223, %224, %cst_55 {dimension_numbers = #tpu.dot_dimension_numbers<[1], [0], [0], [1], [0, 0, 1, 1], [], []>} : vector<8x128xbf16>, vector<128x512xbf16>, vector<8x512xf32> -> vector<8x512xf32>
    %226 = arith.addf %222, %225 : vector<8x512xf32>
    %227 = vector.extract_strided_slice %226 {offsets = [0, 0], sizes = [8, 128], strides = [1, 1]} : vector<8x512xf32> to vector<8x128xf32>
    %228 = arith.negf %227 : vector<8x128xf32>
    %229 = math.exp %228 : vector<8x128xf32>
    %cst_56 = arith.constant 1.000000e+00 : f32
    %230 = vector.broadcast %cst_56 : f32 to vector<8x128xf32>
    %231 = arith.addf %230, %229 : vector<8x128xf32>
    %232 = arith.divf %230, %231 : vector<8x128xf32>
    %233 = vector.extract_strided_slice %226 {offsets = [0, 128], sizes = [8, 128], strides = [1, 1]} : vector<8x512xf32> to vector<8x128xf32>
    %234 = arith.negf %233 : vector<8x128xf32>
    %235 = math.exp %234 : vector<8x128xf32>
    %cst_57 = arith.constant 1.000000e+00 : f32
    %236 = vector.broadcast %cst_57 : f32 to vector<8x128xf32>
    %237 = arith.addf %236, %235 : vector<8x128xf32>
    %238 = arith.divf %236, %237 : vector<8x128xf32>
    %239 = vector.extract_strided_slice %226 {offsets = [0, 256], sizes = [8, 128], strides = [1, 1]} : vector<8x512xf32> to vector<8x128xf32>
    %240 = math.tanh %239 : vector<8x128xf32>
    %241 = vector.extract_strided_slice %226 {offsets = [0, 384], sizes = [8, 128], strides = [1, 1]} : vector<8x512xf32> to vector<8x128xf32>
    %242 = arith.negf %241 : vector<8x128xf32>
    %243 = math.exp %242 : vector<8x128xf32>
    %cst_58 = arith.constant 1.000000e+00 : f32
    %244 = vector.broadcast %cst_58 : f32 to vector<8x128xf32>
    %245 = arith.addf %244, %243 : vector<8x128xf32>
    %246 = arith.divf %244, %245 : vector<8x128xf32>
    %247 = arith.mulf %238, %219 : vector<8x128xf32>
    %248 = arith.mulf %232, %240 : vector<8x128xf32>
    %249 = arith.addf %247, %248 : vector<8x128xf32>
    %250 = math.tanh %249 : vector<8x128xf32>
    %251 = arith.mulf %246, %250 : vector<8x128xf32>
    %c0_59 = arith.constant 0 : index
    %c0_60 = arith.constant 0 : index
    %252 = vector.load %arg9[%c0_59, %c0_60] : memref<8x128xf32, #tpu.memory_space<vmem>>, vector<8x128xf32>
    tpu.vector_store %arg9[%c0_59, %c0_60], %251 {strides = array<i32>} : memref<8x128xf32, #tpu.memory_space<vmem>>, vector<8x128xf32>,
    %c0_61 = arith.constant 0 : index
    %c0_62 = arith.constant 0 : index
    %253 = vector.load %arg10[%c0_61, %c0_62] : memref<8x128xf32, #tpu.memory_space<vmem>>, vector<8x128xf32>
    tpu.vector_store %arg10[%c0_61, %c0_62], %249 {strides = array<i32>} : memref<8x128xf32, #tpu.memory_space<vmem>>, vector<8x128xf32>,
    %c0_i32_63 = arith.constant 0 : i32
    %254 = arith.cmpi eq, %arg1, %c0_i32_63 : i32
    %255 = arith.extui %254 : i1 to i32
    %c0_i32_64 = arith.constant 0 : i32
    %256 = arith.cmpi ne, %255, %c0_i32_64 : i32
    scf.if %256 {
      %257 = arith.truncf %251 : vector<8x128xf32> to vector<8x128xbf16>
      %c0_65 = arith.constant 0 : index
      %c0_66 = arith.constant 0 : index
      %258 = vector.load %arg6[%c0_65, %c0_66] : memref<128x128xbf16, #tpu.memory_space<vmem>>, vector<128x128xbf16>
      %cst_67 = arith.constant dense<0.000000e+00> : vector<8x128xf32>
      %259 = tpu.matmul %257, %258, %cst_67 {dimension_numbers = #tpu.dot_dimension_numbers<[1], [0], [0], [1], [0, 0, 1, 1], [], []>} : vector<8x128xbf16>, vector<128x128xbf16>, vector<8x128xf32> -> vector<8x128xf32>
      %c0_68 = arith.constant 0 : index
      %c0_69 = arith.constant 0 : index
      %260 = vector.load %arg7[%c0_68, %c0_69] : memref<1x128xf32, #tpu.memory_space<vmem>>, vector<1x128xf32>
      %261 = vector.broadcast %260 : vector<1x128xf32> to vector<8x128xf32>
      %262 = arith.addf %259, %261 : vector<8x128xf32>
      %c0_70 = arith.constant 0 : index
      %c0_71 = arith.constant 0 : index
      %263 = vector.load %arg8[%c0_70, %c0_71] : memref<8x128xf32, #tpu.memory_space<vmem>>, vector<8x128xf32>
      tpu.vector_store %arg8[%c0_70, %c0_71], %262 {strides = array<i32>} : memref<8x128xf32, #tpu.memory_space<vmem>>, vector<8x128xf32>,
    } else {
    }
    return
  }
  func.func @transform_0(%arg0: i32, %arg1: i32) -> (i32, i32, i32) {
    %c0_i32 = arith.constant 0 : i32
    %c0_i32_0 = arith.constant 0 : i32
    return %arg0, %arg1, %c0_i32 : i32, i32, i32
  }
  func.func @transform_1(%arg0: i32, %arg1: i32) -> (i32, i32) {
    %c0_i32 = arith.constant 0 : i32
    %c0_i32_0 = arith.constant 0 : i32
    %c0_i32_1 = arith.constant 0 : i32
    return %c0_i32, %c0_i32_0 : i32, i32
  }
  func.func @transform_2(%arg0: i32, %arg1: i32) -> (i32, i32) {
    %c0_i32 = arith.constant 0 : i32
    %c0_i32_0 = arith.constant 0 : i32
    %c0_i32_1 = arith.constant 0 : i32
    return %c0_i32, %c0_i32_0 : i32, i32
  }
  func.func @transform_3(%arg0: i32, %arg1: i32) -> (i32, i32) {
    %c0_i32 = arith.constant 0 : i32
    %c0_i32_0 = arith.constant 0 : i32
    %c0_i32_1 = arith.constant 0 : i32
    return %c0_i32, %c0_i32_0 : i32, i32
  }
  func.func @transform_4(%arg0: i32, %arg1: i32) -> (i32, i32) {
    %c0_i32 = arith.constant 0 : i32
    %c0_i32_0 = arith.constant 0 : i32
    %c0_i32_1 = arith.constant 0 : i32
    return %c0_i32, %c0_i32_0 : i32, i32
  }
  func.func @transform_5(%arg0: i32, %arg1: i32) -> (i32, i32) {
    %c0_i32 = arith.constant 0 : i32
    %c0_i32_0 = arith.constant 0 : i32
    %c0_i32_1 = arith.constant 0 : i32
    return %c0_i32, %c0_i32_0 : i32, i32
  }
  func.func @transform_6(%arg0: i32, %arg1: i32) -> (i32, i32) {
    %c0_i32 = arith.constant 0 : i32
    %c0_i32_0 = arith.constant 0 : i32
    return %arg0, %c0_i32 : i32, i32
  }
}

</mosaic_0001>

<bundles_post_ra>
// kernel: tpu_custom_call.1
= control target key start
LH: loop header
LB: loop body
LE: loop exit
PB: predicated region body
PF: predicated region fallthrough
CT: control target
= control target key end

     0   :  { %11 = vsyncpa [#allocation5], 0  ;;  %s2838_s0 = inlined_call_operand.hbm [shape: bf16[1,64,128], index: 0, kind: input, shape index: {}]   ;;  %s2839_s1 = inlined_call_operand.hbm [shape: bf16[128,512], index: 1, kind: input, shape index: {}]   ;;  %s2840_s2 = inlined_call_operand.hbm [shape: f32[1,512], index: 2, kind: input, shape index: {}]   ;;  %s2841_s3 = inlined_call_operand.hbm [shape: bf16[128,512], index: 3, kind: input, shape index: {}]   ;;  %s2842_s4 = inlined_call_operand.hbm [shape: bf16[128,128], index: 4, kind: input, shape index: {}]   ;;  %s2843_s5 = inlined_call_operand.vmem [shape: f32[1,128], index: 5, kind: input, shape index: {}]   ;;  %s2844_s6 = inlined_call_operand.hbm [shape: f32[8,128], index: 6, kind: output, shape index: {}]  }
   0x1   :  { %12 = vsyncpa [#allocation8], 0 }
   0x2   :  { %13 = vsyncpa [#allocation11], 0 }
   0x3   :  { %14 = vsyncpa [#allocation6], 0  ;;  %s2246_s21 = smov [#allocation7]  }
   0x4   :  { %s32_s22 = sshll.u32 %s2246_s21, 4  ;;  %s33_s22 = int_to_ptr.vmem [resolvable:$true] %s32_s22 }
   0x5   :  { %s2126_s23 = scalar_lea.vmem %s33_s22, 4096  ;;  %p2131_p1 = scmp.lt.s32.totalorder %s33_s22, %s33_s22 }
   0x6   :  { %p2127_p0 = scmp.ne.s32.totalorder %s33_s22, %s2126_s23  ;;  %p2132_p2 = scmp.lt.s32.totalorder %s2126_s23, %s2126_s23 }
   0x8   :  { %p2133_p3 = por %p2132_p2, %p2131_p1 }
   0xa   :  { %p2134_p4 = pnand %p2133_p3, %p2127_p0 }
   0xc   :  { %2137 = shalt.err (!%p2134_p4)
}
   0xd   :  { %s2247_s24 = smov 256   ;;  %s2248_s25 = smov 16  }
   0xe   :  { %38 = dma.hbm_to_vmem [thread:$0]  %s2839_s1, 4096, %s33_s22, [#allocation8], %s2247_s24, %s2247_s24, %s2248_s25  }
   0xf   :  { %s2249_s28 = smov [#allocation10]   ;;  %s2250_s30 = smov [#allocation4]  }
  0x10   :  { %s54_s29 = sshll.u32 %s2249_s28, 4  ;;  %s20_s7 = sshll.u32 %s2250_s30, 4  ;;  %s55_s29 = int_to_ptr.vmem [resolvable:$true] %s54_s29  ;;  %s21_s7 = int_to_ptr.vmem [resolvable:$true] %s20_s7 }
  0x11   :  { %s2146_s8 = scalar_lea.vmem %s55_s29, 4096  ;;  %p2151_p6 = scmp.lt.s32.totalorder %s55_s29, %s55_s29 }
  0x12   :  { %p2147_p5 = scmp.ne.s32.totalorder %s55_s29, %s2146_s8  ;;  %p2152_p7 = scmp.lt.s32.totalorder %s2146_s8, %s2146_s8 }
  0x14   :  { %p2153_p8 = por %p2152_p7, %p2151_p6 }
  0x16   :  { %p2154_p9 = pnand %p2153_p8, %p2147_p5 }
  0x18   :  { %2157 = shalt.err (!%p2154_p9)
}
  0x19   :  { %60 = dma.hbm_to_vmem [thread:$0]  %s2841_s3, 4096, %s55_s29, [#allocation11], %s2247_s24, %s2247_s24, %s2248_s25  }
  0x1a   :  { %s2166_s11 = scalar_lea.vmem %s21_s7, 512  ;;  %p2171_p11 = scmp.lt.s32.totalorder %s21_s7, %s21_s7 }
  0x1b   :  { %p2167_p10 = scmp.ne.s32.totalorder %s21_s7, %s2166_s11  ;;  %p2172_p12 = scmp.lt.s32.totalorder %s2166_s11, %s2166_s11 }
  0x1d   :  { %p2173_p13 = por %p2172_p12, %p2171_p11 }
  0x1f   :  { %p2174_p0 = pnand %p2173_p13, %p2167_p10 }
  0x21   :  { %2177 = shalt.err (!%p2174_p0)
}
  0x22   :  { %s2251_s1 = smov 64   ;;  %s2252_s12 = smov 4  }
  0x23   :  { %26 = dma.hbm_to_vmem [thread:$0]  %s2838_s0, 512, %s21_s7, [#allocation5], %s2251_s1, %s2251_s1, %s2252_s12  }
  0x24   :  { %s2253_s15 = smov [#allocation9]   ;;  %s2254_s17 = smov [#allocation12]  }
  0x25   :  { %s45_s16 = sshll.u32 %s2253_s15, 4  ;;  %s66_s18 = sshll.u32 %s2254_s17, 4  ;;  %s46_s16 = int_to_ptr.vmem [resolvable:$true] %s45_s16  ;;  %s67_s18 = int_to_ptr.vmem [resolvable:$true] %s66_s18 }
  0x26   :  { %s2186_s3 = scalar_lea.vmem %s46_s16, 64  ;;  %p2191_p2 = scmp.lt.s32.totalorder %s46_s16, %s46_s16 }
  0x27   :  { %p2187_p1 = scmp.ne.s32.totalorder %s46_s16, %s2186_s3  ;;  %p2192_p3 = scmp.lt.s32.totalorder %s2186_s3, %s2186_s3 }
  0x29   :  { %p2193_p4 = por %p2192_p3, %p2191_p2 }
  0x2b   :  { %p2194_p5 = pnand %p2193_p4, %p2187_p1 }
  0x2d   :  { %2197 = shalt.err (!%p2194_p5)
}
  0x2e   :  { %48 = dma.hbm_to_vmem [thread:$0]  %s2840_s2, 64, %s46_s16, [#allocation8]  }
  0x2f   :  { %s2206_s21 = scalar_lea.vmem %s67_s18, 1024  ;;  %p2211_p7 = scmp.lt.s32.totalorder %s67_s18, %s67_s18 }
  0x30   :  { %p2207_p6 = scmp.ne.s32.totalorder %s67_s18, %s2206_s21  ;;  %p2212_p8 = scmp.lt.s32.totalorder %s2206_s21, %s2206_s21 }
  0x32   :  { %p2213_p9 = por %p2212_p8, %p2211_p7 }
  0x34   :  { %p2214_p10 = pnand %p2213_p9, %p2207_p6 }
  0x36   :  { %2217 = shalt.err (!%p2214_p10)
}
  0x37   :  { %72 = dma.hbm_to_vmem [thread:$0]  %s2842_s4, 1024, %s67_s18, [#allocation11], %s2251_s1, %s2251_s1, %s2252_s12  }
  0x38   :  { %2238 = dma.done.wait [#allocation5], 512  }
  0x39   :  { %2239 = vsyncadd [#allocation5], 4294966784 }
  0x3a   :  { %2240 = dma.done.wait [#allocation8], 4160  }
  0x3b   :  { %2241 = vsyncadd [#allocation8], 4294963136 }
  0x3c   :  { %2242 = dma.done.wait [#allocation11], 5120  }
  0x3d   :  { %2243 = vsyncadd [#allocation11], 4294962176  ;;  %v2845_v0 = vmov 0   ;;  %v1850_v1 = vld [vmem:[#allocation7 + $0xe4] ss:$16 sps:$4 sm:$0xff]   ;;  %v1911_v44 = vld [vmem:[#allocation4 + $0x8] sm:$0xff]  }
  0x3e   :  { %375 = vmatprep.mubr.bf16.mxu0 %v2845_v0  ;;  %448 = vmatprep.mubr.bf16.mxu1 %v2845_v0  ;;  %v1852_v2 = vld [vmem:[#allocation7 + $0xec] ss:$16 sps:$4 sm:$0xff]   ;;  %v1854_v3 = vld [vmem:[#allocation7 + $0xe0] ss:$16 sps:$4 sm:$0xff]   ;;  %v1855_v4 = vld [vmem:[#allocation7 + $0xe8] ss:$16 sps:$4 sm:$0xff]  }
  0x3f   :  { %343 = vmatprep.subr.bf16.mxu0 %v1850_v1  ;;  %416 = vmatprep.subr.bf16.mxu1 %v1852_v2  ;;  %v1856_v5 = vld [vmem:[#allocation7 + $0xc4] ss:$16 sps:$4 sm:$0xff]   ;;  %v1858_v6 = vld [vmem:[#allocation7 + $0xcc] ss:$16 sps:$4 sm:$0xff]   ;;  %v1860_v7 = vld [vmem:[#allocation7 + $0xc0] ss:$16 sps:$4 sm:$0xff]  }
  0x40   :  { %344 = vmatpush1.bf16.msra.mxu0 %v1854_v3  ;;  %417 = vmatpush1.bf16.msra.mxu1 %v1855_v4  ;;  %v1861_v8 = vld [vmem:[#allocation7 + $0xc8] ss:$16 sps:$4 sm:$0xff]   ;;  %v1862_v9 = vld [vmem:[#allocation7 + $0xa4] ss:$16 sps:$4 sm:$0xff]   ;;  %v1864_v10 = vld [vmem:[#allocation7 + $0xac] ss:$16 sps:$4 sm:$0xff]  }
  0x41   :  { %345 = vmatprep.subr.bf16.mxu0 %v1856_v5  ;;  %418 = vmatprep.subr.bf16.mxu1 %v1858_v6  ;;  %v1866_v11 = vld [vmem:[#allocation7 + $0xa0] ss:$16 sps:$4 sm:$0xff]   ;;  %v1867_v12 = vld [vmem:[#allocation7 + $0xa8] ss:$16 sps:$4 sm:$0xff]   ;;  %v1868_v13 = vld [vmem:[#allocation7 + $0x84] ss:$16 sps:$4 sm:$0xff]  }
  0x42   :  { %v1870_v14 = vld [vmem:[#allocation7 + $0x8c] ss:$16 sps:$4 sm:$0xff]   ;;  %v1872_v15 = vld [vmem:[#allocation7 + $0x80] ss:$16 sps:$4 sm:$0xff]   ;;  %v1873_v16 = vld [vmem:[#allocation7 + $0x88] ss:$16 sps:$4 sm:$0xff]  }
  0x43   :  { %v1874_v17 = vld [vmem:[#allocation7 + $0x64] ss:$16 sps:$4 sm:$0xff]   ;;  %v1876_v18 = vld [vmem:[#allocation7 + $0x6c] ss:$16 sps:$4 sm:$0xff]   ;;  %v1878_v19 = vld [vmem:[#allocation7 + $0x60] ss:$16 sps:$4 sm:$0xff]  }
  0x44   :  { %346 = vmatpush1.bf16.msra.mxu0 %v1860_v7  ;;  %419 = vmatpush1.bf16.msra.mxu1 %v1861_v8  ;;  %v1879_v20 = vld [vmem:[#allocation7 + $0x68] ss:$16 sps:$4 sm:$0xff]   ;;  %v1880_v21 = vld [vmem:[#allocation7 + $0x44] ss:$16 sps:$4 sm:$0xff]   ;;  %v1882_v22 = vld [vmem:[#allocation7 + $0x4c] ss:$16 sps:$4 sm:$0xff]   ;;  %v139_v7 = vlaneseq }
  0x45   :  { %347 = vmatprep.subr.bf16.mxu0 %v1862_v9  ;;  %420 = vmatprep.subr.bf16.mxu1 %v1864_v10  ;;  %v1884_v23 = vld [vmem:[#allocation7 + $0x40] ss:$16 sps:$4 sm:$0xff]   ;;  %v1885_v24 = vld [vmem:[#allocation7 + $0x48] ss:$16 sps:$4 sm:$0xff]   ;;  %v1886_v25 = vld [vmem:[#allocation7 + $0x24] ss:$16 sps:$4 sm:$0xff]  }
  0x46   :  { %v1888_v26 = vld [vmem:[#allocation7 + $0x2c] ss:$16 sps:$4 sm:$0xff]   ;;  %v1890_v27 = vld [vmem:[#allocation7 + $0x20] ss:$16 sps:$4 sm:$0xff]   ;;  %v1891_v28 = vld [vmem:[#allocation7 + $0x28] ss:$16 sps:$4 sm:$0xff]  }
  0x47   :  { %v1892_v29 = vld [vmem:[#allocation7 + $0x4] ss:$16 sps:$4 sm:$0xff]   ;;  %v1894_v30 = vld [vmem:[#allocation7 + $0xc] ss:$16 sps:$4 sm:$0xff]   ;;  %v1896_v31 = vld [vmem:[#allocation7] ss:$16 sps:$4 sm:$0xff]  }
  0x48   :  { %348 = vmatpush1.bf16.msra.mxu0 %v1866_v11  ;;  %421 = vmatpush1.bf16.msra.mxu1 %v1867_v12  ;;  %v1897_v32 = vld [vmem:[#allocation7 + $0x8] ss:$16 sps:$4 sm:$0xff]   ;;  %v2314_v34 = vld [vmem:[#allocation10 + $0xec] ss:$16 sps:$4 sm:$0xff]   ;;  %v2316_v36 = vld [vmem:[#allocation10 + $0xe0] ss:$16 sps:$4 sm:$0xff]  }
  0x49   :  { %349 = vmatprep.subr.bf16.mxu0 %v1868_v13  ;;  %422 = vmatprep.subr.bf16.mxu1 %v1870_v14  ;;  %v2312_v33 = vld [vmem:[#allocation10 + $0xe4] ss:$16 sps:$4 sm:$0xff]   ;;  %v1898_v35 = vld [vmem:[#allocation4] sm:$0xff]   ;;  %v2318_v37 = vld [vmem:[#allocation10 + $0xe8] ss:$16 sps:$4 sm:$0xff]   ;;  %v2256_v6 = vmov 0.0|0.0  }
  0x4a   :  { %v2322_v38 = vld [vmem:[#allocation10 + $0xc4] ss:$16 sps:$4 sm:$0xff]   ;;  %v2324_v39 = vld [vmem:[#allocation10 + $0xcc] ss:$16 sps:$4 sm:$0xff]   ;;  %v2326_v40 = vld [vmem:[#allocation10 + $0xc0] ss:$16 sps:$4 sm:$0xff]  }
  0x4b   :  { %v2330_v41 = vld [vmem:[#allocation10 + $0xc8] ss:$16 sps:$4 sm:$0xff]   ;;  %v2334_v42 = vld [vmem:[#allocation10 + $0xa4] ss:$16 sps:$4 sm:$0xff]   ;;  %v2336_v43 = vld [vmem:[#allocation10 + $0xac] ss:$16 sps:$4 sm:$0xff]  }
  0x4c   :  { %350 = vmatpush1.bf16.msra.mxu0 %v1872_v15  ;;  %423 = vmatpush1.bf16.msra.mxu1 %v1873_v16  ;;  %v2340_v45 = vld [vmem:[#allocation10 + $0xa0] ss:$16 sps:$4 sm:$0xff]   ;;  %v2342_v46 = vld [vmem:[#allocation10 + $0xa8] ss:$16 sps:$4 sm:$0xff]   ;;  %v2346_v47 = vld [vmem:[#allocation10 + $0x84] ss:$16 sps:$4 sm:$0xff]  }
  0x4d   :  { %351 = vmatprep.subr.bf16.mxu0 %v1874_v17  ;;  %424 = vmatprep.subr.bf16.mxu1 %v1876_v18  ;;  %v2350_v48 = vld [vmem:[#allocation10 + $0x8c] ss:$16 sps:$4 sm:$0xff]   ;;  %v2352_v49 = vld [vmem:[#allocation10 + $0x80] ss:$16 sps:$4 sm:$0xff]   ;;  %v2354_v50 = vld [vmem:[#allocation10 + $0x88] ss:$16 sps:$4 sm:$0xff]  }
  0x4e   :  { %v2358_v51 = vld [vmem:[#allocation10 + $0x64] ss:$16 sps:$4 sm:$0xff]   ;;  %v2362_v52 = vld [vmem:[#allocation10 + $0x6c] ss:$16 sps:$4 sm:$0xff]   ;;  %v2366_v54 = vld [vmem:[#allocation10 + $0x60] ss:$16 sps:$4 sm:$0xff]  }
  0x4f   :  { %v1924_v53 = vld [vmem:[#allocation4 + $0x10] sm:$0xff]   ;;  %v2368_v55 = vld [vmem:[#allocation10 + $0x68] ss:$16 sps:$4 sm:$0xff]   ;;  %v2370_v56 = vld [vmem:[#allocation10 + $0x44] ss:$16 sps:$4 sm:$0xff]   ;;  %v140_v8 = vshrl.u32 %v139_v7, 7 }
  0x50   :  { %352 = vmatpush1.bf16.msra.mxu0 %v1878_v19  ;;  %425 = vmatpush1.bf16.msra.mxu1 %v1879_v20  ;;  %v2372_v57 = vld [vmem:[#allocation10 + $0x4c] ss:$16 sps:$4 sm:$0xff]   ;;  %v2380_v58 = vld [vmem:[#allocation10 + $0x40] ss:$16 sps:$4 sm:$0xff]   ;;  %v2382_v59 = vld [vmem:[#allocation10 + $0x48] ss:$16 sps:$4 sm:$0xff]  }
  0x51   :  { %353 = vmatprep.subr.bf16.mxu0 %v1880_v21  ;;  %426 = vmatprep.subr.bf16.mxu1 %v1882_v22  ;;  %v2386_v60 = vld [vmem:[#allocation10 + $0x24] ss:$16 sps:$4 sm:$0xff]   ;;  %v2388_v61 = vld [vmem:[#allocation10 + $0x2c] ss:$16 sps:$4 sm:$0xff]   ;;  %v2394_v63 = vld [vmem:[#allocation10 + $0x20] ss:$16 sps:$4 sm:$0xff]  }
  0x52   :  { %v1937_v62 = vld [vmem:[#allocation4 + $0x18] sm:$0xff]   ;;  %v2402_v3 = vld [vmem:[#allocation10 + $0xc] ss:$16 sps:$4 sm:$0xff]   ;;  %v2406_v4 = vld [vmem:[#allocation10] ss:$16 sps:$4 sm:$0xff]   ;;  %v149_v9 = vsub.s32 2, %v140_v8 }
  0x53   :  { %v2396_v1 = vld [vmem:[#allocation10 + $0x28] ss:$16 sps:$4 sm:$0xff]   ;;  %v2400_v2 = vld [vmem:[#allocation10 + $0x4] ss:$16 sps:$4 sm:$0xff]   ;;  %v141_v10 = vsub.s32 0, %v140_v8  ;;  %v153_v11 = vsub.s32 3, %v140_v8 }
  0x54   :  { %354 = vmatpush1.bf16.msra.mxu0 %v1884_v23  ;;  %427 = vmatpush1.bf16.msra.mxu1 %v1885_v24  ;;  %v2408_v5 = vld [vmem:[#allocation10 + $0x8] ss:$16 sps:$4 sm:$0xff]   ;;  %v137_v12 = vld [vmem:[#allocation9] sm:$0xf]  ;;  %v145_v16 = vsub.s32 1, %v140_v8  ;;  %vm2258_vm0 = vmmov 0  }
  0x55   :  { %355 = vmatprep.subr.bf16.mxu0 %v1886_v25  ;;  %428 = vmatprep.subr.bf16.mxu1 %v1888_v26  ;;  %v2456_v15 = vrot.slane %v137_v12, %v149_v9  ;;  %v142_v19 = vrot.slane %v137_v12, %v141_v10  ;;  %v2462_v20 = vrot.slane %v137_v12, %v153_v11  ;;  %s2259_s23 = smov [#allocation13]  }
  0x56   :  { %v146_v23 = vrot.slane %v137_v12, %v145_v16  ;;  %s1695_s24 = sshll.u32 %s2259_s23, 4  ;;  %s1696_s24 = int_to_ptr.vmem [resolvable:$true] %s1695_s24 }
  0x57   :  { %s2218_s25 = scalar_lea.vmem %s1696_s24, 128  ;;  %p2223_p12 = scmp.lt.s32.totalorder %s1696_s24, %s1696_s24 }
  0x58   :  { %356 = vmatpush1.bf16.msra.mxu0 %v1890_v27  ;;  %429 = vmatpush1.bf16.msra.mxu1 %v1891_v28  ;;  %p2219_p11 = scmp.ne.s32.totalorder %s1696_s24, %s2218_s25  ;;  %p2224_p13 = scmp.lt.s32.totalorder %s2218_s25, %s2218_s25 }
  0x59   :  { %357 = vmatprep.subr.bf16.mxu0 %v1892_v29  ;;  %430 = vmatprep.subr.bf16.mxu1 %v1894_v30 }
  0x5a   :  { %p2225_p0 = por %p2224_p13, %p2223_p12 }
  0x5c   :  { %358 = vmatpush1.bf16.msra.mxu0 %v1896_v31  ;;  %431 = vmatpush1.bf16.msra.mxu1 %v1897_v32  ;;  %p2226_p1 = pnand %p2225_p0, %p2219_p11 }
  0x5d   :  { %684 = vmatprep.subr.bf16.mxu0 %v2312_v33  ;;  %725 = vmatprep.subr.bf16.mxu1 %v2314_v34 }
  0x5f   :  { %376 = vmatmul.mubr.bf16.vlgmr.msra.gmra.mxu0 %v1898_v35  ;;  %449 = vmatmul.mubr.bf16.vlgmr.msra.gmra.mxu1 %v1898_v35 }
  0x60   :  { %685 = vmatpush1.bf16.msra.mxu0 %v2316_v36  ;;  %726 = vmatpush1.bf16.msra.mxu1 %v2318_v37 }
  0x61   :  { %686 = vmatprep.subr.bf16.mxu0 %v2322_v38  ;;  %727 = vmatprep.subr.bf16.mxu1 %v2324_v39 }
  0x62   :  { %385 = vmatprep.mubr.bf16.mxu0 %v2845_v0  ;;  %458 = vmatprep.mubr.bf16.mxu1 %v2845_v0 }
  0x64   :  { %687 = vmatpush1.bf16.msra.mxu0 %v2326_v40  ;;  %728 = vmatpush1.bf16.msra.mxu1 %v2330_v41 }
  0x65   :  { %688 = vmatprep.subr.bf16.mxu0 %v2334_v42  ;;  %729 = vmatprep.subr.bf16.mxu1 %v2336_v43 }
  0x67   :  { %386 = vmatmul.mubr.bf16.gmra.mxu0 %v1911_v44  ;;  %459 = vmatmul.mubr.bf16.gmra.mxu1 %v1911_v44 }
  0x68   :  { %689 = vmatpush1.bf16.msra.mxu0 %v2340_v45  ;;  %730 = vmatpush1.bf16.msra.mxu1 %v2342_v46 }
  0x69   :  { %690 = vmatprep.subr.bf16.mxu0 %v2346_v47  ;;  %731 = vmatprep.subr.bf16.mxu1 %v2350_v48 }
  0x6a   :  { %395 = vmatprep.mubr.bf16.mxu0 %v2845_v0  ;;  %468 = vmatprep.mubr.bf16.mxu1 %v2845_v0 }
  0x6c   :  { %691 = vmatpush1.bf16.msra.mxu0 %v2352_v49  ;;  %732 = vmatpush1.bf16.msra.mxu1 %v2354_v50 }
  0x6d   :  { %692 = vmatprep.subr.bf16.mxu0 %v2358_v51  ;;  %733 = vmatprep.subr.bf16.mxu1 %v2362_v52 }
  0x6f   :  { %396 = vmatmul.mubr.bf16.gmra.mxu0 %v1924_v53  ;;  %469 = vmatmul.mubr.bf16.gmra.mxu1 %v1924_v53 }
  0x70   :  { %693 = vmatpush1.bf16.msra.mxu0 %v2366_v54  ;;  %734 = vmatpush1.bf16.msra.mxu1 %v2368_v55 }
  0x71   :  { %694 = vmatprep.subr.bf16.mxu0 %v2370_v56  ;;  %735 = vmatprep.subr.bf16.mxu1 %v2372_v57 }
  0x72   :  { %405 = vmatprep.mubr.bf16.mxu0 %v2845_v0  ;;  %478 = vmatprep.mubr.bf16.mxu1 %v2845_v0 }
  0x74   :  { %695 = vmatpush1.bf16.msra.mxu0 %v2380_v58  ;;  %736 = vmatpush1.bf16.msra.mxu1 %v2382_v59 }
  0x75   :  { %696 = vmatprep.subr.bf16.mxu0 %v2386_v60  ;;  %737 = vmatprep.subr.bf16.mxu1 %v2388_v61 }
  0x77   :  { %406 = vmatmul.mubr.bf16.gmra.mxu0 %v1937_v62  ;;  %479 = vmatmul.mubr.bf16.gmra.mxu1 %v1937_v62 }
  0x78   :  { %697 = vmatpush1.bf16.msra.mxu0 %v2394_v63  ;;  %738 = vmatpush1.bf16.msra.mxu1 %v2396_v1 }
  0x79   :  { %698 = vmatprep.subr.bf16.mxu0 %v2400_v2  ;;  %739 = vmatprep.subr.bf16.mxu1 %v2402_v3 }
  0x7a   :  { %716 = vmatprep.mubr.bf16.mxu0 %v2845_v0  ;;  %757 = vmatprep.mubr.bf16.mxu1 %v2845_v0 }
  0x7c   :  { %699 = vmatpush1.bf16.msra.mxu0 %v2406_v4  ;;  %740 = vmatpush1.bf16.msra.mxu1 %v2408_v5 }
  0x7d   :  { %795 = vmatprep.subr.bf16.mxu0 %v2312_v33  ;;  %836 = vmatprep.subr.bf16.mxu1 %v2314_v34 }
  0x7f   :  { %717 = vmatmul.mubr.bf16.vlgmr.msra.gmra.mxu0 %v2256_v6  ;;  %758 = vmatmul.mubr.bf16.vlgmr.msra.gmra.mxu1 %v2256_v6 }
  0x80   :  { %796 = vmatpush1.bf16.msra.mxu0 %v2316_v36  ;;  %837 = vmatpush1.bf16.msra.mxu1 %v2318_v37 }
  0x81   :  { %797 = vmatprep.subr.bf16.mxu0 %v2322_v38  ;;  %838 = vmatprep.subr.bf16.mxu1 %v2324_v39 }
  0x82   :  { %827 = vmatprep.mubr.bf16.mxu0 %v2845_v0  ;;  %868 = vmatprep.mubr.bf16.mxu1 %v2845_v0 }
  0x84   :  { %798 = vmatpush1.bf16.msra.mxu0 %v2326_v40  ;;  %839 = vmatpush1.bf16.msra.mxu1 %v2330_v41 }
  0x85   :  { %799 = vmatprep.subr.bf16.mxu0 %v2334_v42  ;;  %840 = vmatprep.subr.bf16.mxu1 %v2336_v43 }
  0x88   :  { %800 = vmatpush1.bf16.msra.mxu0 %v2340_v45  ;;  %841 = vmatpush1.bf16.msra.mxu1 %v2342_v46 }
  0x89   :  { %801 = vmatprep.subr.bf16.mxu0 %v2346_v47  ;;  %842 = vmatprep.subr.bf16.mxu1 %v2350_v48 }
  0x8c   :  { %802 = vmatpush1.bf16.msra.mxu0 %v2352_v49  ;;  %843 = vmatpush1.bf16.msra.mxu1 %v2354_v50 }
  0x8d   :  { %803 = vmatprep.subr.bf16.mxu0 %v2358_v51  ;;  %844 = vmatprep.subr.bf16.mxu1 %v2362_v52 }
  0x90   :  { %804 = vmatpush1.bf16.msra.mxu0 %v2366_v54  ;;  %845 = vmatpush1.bf16.msra.mxu1 %v2368_v55 }
  0x91   :  { %805 = vmatprep.subr.bf16.mxu0 %v2370_v56  ;;  %846 = vmatprep.subr.bf16.mxu1 %v2372_v57 }
  0x94   :  { %806 = vmatpush1.bf16.msra.mxu0 %v2380_v58  ;;  %847 = vmatpush1.bf16.msra.mxu1 %v2382_v59 }
  0x95   :  { %807 = vmatprep.subr.bf16.mxu0 %v2386_v60  ;;  %848 = vmatprep.subr.bf16.mxu1 %v2388_v61 }
  0x98   :  { %808 = vmatpush1.bf16.msra.mxu0 %v2394_v63  ;;  %849 = vmatpush1.bf16.msra.mxu1 %v2396_v1 }
  0x99   :  { %809 = vmatprep.subr.bf16.mxu0 %v2400_v2  ;;  %850 = vmatprep.subr.bf16.mxu1 %v2402_v3 }
  0x9c   :  { %810 = vmatpush1.bf16.msra.mxu0 %v2406_v4  ;;  %851 = vmatpush1.bf16.msra.mxu1 %v2408_v5 }
  0x9d   :  { %906 = vmatprep.subr.bf16.mxu0 %v2312_v33  ;;  %947 = vmatprep.subr.bf16.mxu1 %v2314_v34 }
 0x11f   :  { %v2452_v13 = vpop.f32.mrf.mxu0  ;;  %v2454_v14 = vpop.f32.mrf.mxu1 }
 0x121   :  { %v2458_v17 = vpop.f32.mrf.mxu0  ;;  %v2460_v18 = vpop.f32.mrf.mxu1 }
 0x123   :  { %v381_v21 = vpop.f32.mrf.mxu0  ;;  %v454_v22 = vpop.f32.mrf.mxu1 }
 0x124   :  { %v2464_v24 = vadd.f32 %v381_v21, %v142_v19  ;;  %v2467_v25 = vadd.f32 %v454_v22, %v2456_v15 }
 0x125   :  { %v383_v26 = vpop.f32.mrf.mxu0  ;;  %v456_v27 = vpop.f32.mrf.mxu1 }
 0x126   :  { %v2469_v28 = vadd.f32 %v383_v26, %v146_v23  ;;  %v2472_v29 = vadd.f32 %v456_v27, %v2462_v20 }
 0x127   :  { %v387_v30 = vpop.f32.mrf.mxu0  ;;  %v460_v31 = vpop.f32.mrf.mxu1 }
 0x128   :  { %v2474_v32 = vadd.f32 %v387_v30, %v142_v19  ;;  %v2477_v35 = vadd.f32 %v460_v31, %v2456_v15 }
 0x129   :  { %v389_v44 = vpop.f32.mrf.mxu0  ;;  %v462_v53 = vpop.f32.mrf.mxu1 }
 0x12a   :  { %2847 = vst [vmem:[#allocation18_spill] sm:$0xff] %v2477_v35  ;;  %v2479_v62 = vadd.f32 %v389_v44, %v146_v23  ;;  %v2482_v6 = vadd.f32 %v462_v53, %v2462_v20 }
 0x12b   :  { %v391_v7 = vpop.f32.mrf.mxu0  ;;  %v464_v8 = vpop.f32.mrf.mxu1 }
 0x12c   :  { %v2484_v9 = vadd.f32 %v391_v7, %v142_v19  ;;  %v2487_v10 = vadd.f32 %v464_v8, %v2456_v15 }
 0x12d   :  { %v393_v11 = vpop.f32.mrf.mxu0  ;;  %v466_v12 = vpop.f32.mrf.mxu1 }
 0x12e   :  { %2848 = vst [vmem:[#allocation19_spill] sm:$0xff] %v2484_v9  ;;  %2849 = vst [vmem:[#allocation20_spill] sm:$0xff] %v2487_v10  ;;  %v2489_v16 = vadd.f32 %v393_v11, %v146_v23  ;;  %v2492_v21 = vadd.f32 %v466_v12, %v2462_v20 }
 0x12f   :  { %v397_v22 = vpop.f32.mrf.mxu0  ;;  %v470_v26 = vpop.f32.mrf.mxu1 }
 0x130   :  { %2850 = vst [vmem:[#allocation21_spill] sm:$0xff] %v2489_v16  ;;  %2851 = vst [vmem:[#allocation22_spill] sm:$0xff] %v2492_v21  ;;  %v2494_v27 = vadd.f32 %v397_v22, %v142_v19  ;;  %v2497_v30 = vadd.f32 %v470_v26, %v2456_v15 }
 0x131   :  { %v399_v31 = vpop.f32.mrf.mxu0  ;;  %v472_v44 = vpop.f32.mrf.mxu1 }
 0x132   :  { %2852 = vst [vmem:[#allocation23_spill] sm:$0xff] %v2494_v27  ;;  %2853 = vst [vmem:[#allocation24_spill] sm:$0xff] %v2497_v30  ;;  %v2499_v53 = vadd.f32 %v399_v31, %v146_v23  ;;  %v2502_v7 = vadd.f32 %v472_v44, %v2462_v20 }
 0x133   :  { %v401_v8 = vpop.f32.mrf.mxu0  ;;  %v474_v11 = vpop.f32.mrf.mxu1 }
 0x134   :  { %2854 = vst [vmem:[#allocation25_spill] sm:$0xff] %v2499_v53  ;;  %2855 = vst [vmem:[#allocation26_spill] sm:$0xff] %v2502_v7  ;;  %v2504_v0 = vadd.f32 %v401_v8, %v142_v19  ;;  %v2507_v12 = vadd.f32 %v474_v11, %v2456_v15 }
 0x135   :  { %v403_v10 = vpop.f32.mrf.mxu0  ;;  %v476_v22 = vpop.f32.mrf.mxu1 }
 0x136   :  { %2856 = vst [vmem:[#allocation27_spill] sm:$0xff] %v2504_v0  ;;  %2857 = vst [vmem:[#allocation28_spill] sm:$0xff] %v2507_v12  ;;  %v2509_v27 = vadd.f32 %v403_v10, %v146_v23  ;;  %v2512_v26 = vadd.f32 %v476_v22, %v2462_v20 }
 0x137   :  { %v407_v30 = vpop.f32.mrf.mxu0  ;;  %v480_v31 = vpop.f32.mrf.mxu1 }
 0x138   :  { %2858 = vst [vmem:[#allocation29_spill] sm:$0xff] %v2509_v27  ;;  %2859 = vst [vmem:[#allocation30_spill] sm:$0xff] %v2512_v26  ;;  %v2514_v53 = vadd.f32 %v407_v30, %v142_v19  ;;  %v2517_v44 = vadd.f32 %v480_v31, %v2456_v15 }
 0x139   :  { %v409_v7 = vpop.f32.mrf.mxu0  ;;  %v482_v8 = vpop.f32.mrf.mxu1 }
 0x13a   :  { %2860 = vst [vmem:[#allocation31_spill] sm:$0xff] %v2514_v53  ;;  %2861 = vst [vmem:[#allocation32_spill] sm:$0xff] %v2517_v44  ;;  %v2519_v0 = vadd.f32 %v409_v7, %v146_v23  ;;  %v2522_v11 = vadd.f32 %v482_v8, %v2462_v20  ;;  %v378_v53 = vadd.f32 %v2452_v13, %v142_v19 }
 0x13b   :  { %v411_v12 = vpop.f32.mrf.mxu0  ;;  %v484_v10 = vpop.f32.mrf.mxu1  ;;  %v380_v8 = vadd.f32 %v2458_v17, %v146_v23 }
 0x13c   :  { %2862 = vst [vmem:[#allocation33_spill] sm:$0xff] %v2519_v0  ;;  %2863 = vst [vmem:[#allocation34_spill] sm:$0xff] %v2522_v11  ;;  %v2524_v27 = vadd.f32 %v411_v12, %v142_v19  ;;  %v2527_v22 = vadd.f32 %v484_v10, %v2456_v15  ;;  %v453_v19 = vadd.f32 %v2460_v18, %v2462_v20 }
 0x13d   :  { %v413_v26 = vpop.f32.mrf.mxu0  ;;  %v486_v30 = vpop.f32.mrf.mxu1 }
 0x13e   :  { %2864 = vst [vmem:[#allocation35_spill] sm:$0xff] %v2524_v27  ;;  %2865 = vst [vmem:[#allocation36_spill] sm:$0xff] %v2527_v22  ;;  %v2530_v31 = vadd.f32 %v413_v26, %v146_v23  ;;  %v2533_v44 = vadd.f32 %v486_v30, %v2462_v20  ;;  %v451_v30 = vadd.f32 %v2454_v14, %v2456_v15 }
 0x13f   :  { %v718_v7 = vpop.f32.mrf.mxu0  ;;  %v759_v0 = vpop.f32.mrf.mxu1 }
 0x140   :  { %v766_v11 = vadd.f32 %v718_v7, %v378_v53  ;;  %v768_v53 = vadd.f32 %v759_v0, %v451_v30 }
 0x141   :  { %v720_v21 = vpop.f32.mrf.mxu0  ;;  %v761_v12 = vpop.f32.mrf.mxu1 }
 0x142   :  { %v1774_v27 = vmul.f32 -1.442695, %v766_v11  ;;  %v767_v16 = vadd.f32 %v720_v21, %v380_v8  ;;  %v769_v26 = vadd.f32 %v761_v12, %v453_v19 }
 0x143   :  { %v722_v10 = vpop.f32.mrf.mxu0  ;;  %v763_v22 = vpop.f32.mrf.mxu1 }
 0x144   :  { %1958 = vpow2.f32 %v1774_v27  ;;  %v1775_v9 = vmul.f32 -1.442695, %v767_v16  ;;  %v1776_v17 = vmul.f32 -1.442695, %v769_v26  ;;  %v2866_v10 = vmov 0  }
 0x145   :  { %v723_v35 = vpop.f32.mrf.mxu0  ;;  %v764_v13 = vpop.f32.mrf.mxu1 }
 0x146   :  { %1960 = vpow2.f32 %v1775_v9 }
 0x147   :  { %1962 = vpow2.f32 %v1776_v17 }
 0x151   :  { %v1959_v23 = vpop.eup %1958 }
 0x152   :  { %v773_v7 = vadd.f32 1.0, %v1959_v23 }
 0x153   :  { %v1961_v11 = vpop.eup %1960 }
 0x154   :  { %1964 = vrcp.f32 %v773_v7  ;;  %v779_v21 = vadd.f32 1.0, %v1961_v11  ;;  %v1963_v35 = vpop.eup %1962 }
 0x155   :  { %1966 = vtanh.f32 %v768_v53  ;;  %v786_v22 = vadd.f32 1.0, %v1963_v35 }
 0x156   :  { %1968 = vrcp.f32 %v779_v21 }
 0x157   :  { %1970 = vrcp.f32 %v786_v22 }
 0x161   :  { %v1965_v16 = vpop.eup %1964 }
 0x162   :  { %v1967_v9 = vpop.eup %1966 }
 0x163   :  { %v1969_v27 = vpop.eup %1968  ;;  %v790_v20 = vmul.f32 %v1967_v9, %v1965_v16 }
 0x164   :  { %v789_v18 = vmul.f32 0.0, %v1969_v27  ;;  %v1971_v0 = vpop.eup %1970 }
 0x166   :  { %v2540_v8 = vadd.f32 %v790_v20, %v789_v18 }
 0x168   :  { %1972 = vtanh.f32 %v2540_v8 }
 0x175   :  { %v1973_v14 = vpop.eup %1972 }
 0x176   :  { %v793_v15 = vmul.f32 %v1973_v14, %v1971_v0 }
 0x178   :  { %v794_v12 = vpack.c.bf16 %v793_v15, %v793_v15 }
 0x17a   :  { %828 = vmatmul.mubr.bf16.vlgmr.msra.gmra.mxu0 %v794_v12  ;;  %869 = vmatmul.mubr.bf16.vlgmr.msra.gmra.mxu1 %v794_v12 }
 0x17b   :  { %907 = vmatpush1.bf16.msra.mxu0 %v2316_v36  ;;  %948 = vmatpush1.bf16.msra.mxu1 %v2318_v37 }
 0x17c   :  { %908 = vmatprep.subr.bf16.mxu0 %v2322_v38  ;;  %949 = vmatprep.subr.bf16.mxu1 %v2324_v39 }
 0x17d   :  { %938 = vmatprep.mubr.bf16.mxu0 %v2866_v10  ;;  %979 = vmatprep.mubr.bf16.mxu1 %v2866_v10 }
 0x17f   :  { %909 = vmatpush1.bf16.msra.mxu0 %v2326_v40  ;;  %950 = vmatpush1.bf16.msra.mxu1 %v2330_v41 }
 0x180   :  { %910 = vmatprep.subr.bf16.mxu0 %v2334_v42  ;;  %951 = vmatprep.subr.bf16.mxu1 %v2336_v43 }
 0x183   :  { %911 = vmatpush1.bf16.msra.mxu0 %v2340_v45  ;;  %952 = vmatpush1.bf16.msra.mxu1 %v2342_v46 }
 0x184   :  { %912 = vmatprep.subr.bf16.mxu0 %v2346_v47  ;;  %953 = vmatprep.subr.bf16.mxu1 %v2350_v48 }
 0x187   :  { %913 = vmatpush1.bf16.msra.mxu0 %v2352_v49  ;;  %954 = vmatpush1.bf16.msra.mxu1 %v2354_v50 }
 0x188   :  { %914 = vmatprep.subr.bf16.mxu0 %v2358_v51  ;;  %955 = vmatprep.subr.bf16.mxu1 %v2362_v52 }
 0x18b   :  { %915 = vmatpush1.bf16.msra.mxu0 %v2366_v54  ;;  %956 = vmatpush1.bf16.msra.mxu1 %v2368_v55 }
 0x18c   :  { %916 = vmatprep.subr.bf16.mxu0 %v2370_v56  ;;  %957 = vmatprep.subr.bf16.mxu1 %v2372_v57 }
 0x18f   :  { %917 = vmatpush1.bf16.msra.mxu0 %v2380_v58  ;;  %958 = vmatpush1.bf16.msra.mxu1 %v2382_v59 }
 0x190   :  { %918 = vmatprep.subr.bf16.mxu0 %v2386_v60  ;;  %959 = vmatprep.subr.bf16.mxu1 %v2388_v61 }
 0x193   :  { %919 = vmatpush1.bf16.msra.mxu0 %v2394_v63  ;;  %960 = vmatpush1.bf16.msra.mxu1 %v2396_v1 }
 0x194   :  { %920 = vmatprep.subr.bf16.mxu0 %v2400_v2  ;;  %961 = vmatprep.subr.bf16.mxu1 %v2402_v3 }
 0x197   :  { %921 = vmatpush1.bf16.msra.mxu0 %v2406_v4  ;;  %962 = vmatpush1.bf16.msra.mxu1 %v2408_v5 }
 0x198   :  { %1017 = vmatprep.subr.bf16.mxu0 %v2312_v33  ;;  %1058 = vmatprep.subr.bf16.mxu1 %v2314_v34 }
 0x23a   :  { %v829_v13 = vpop.f32.mrf.mxu0  ;;  %v870_v19 = vpop.f32.mrf.mxu1 }
 0x23b   :  { %v877_v26 = vadd.f32 %v829_v13, %v2464_v24  ;;  %v879_v27 = vadd.f32 %v870_v19, %v2467_v25 }
 0x23c   :  { %v831_v30 = vpop.f32.mrf.mxu0  ;;  %v872_v17 = vpop.f32.mrf.mxu1 }
 0x23d   :  { %v1777_v23 = vmul.f32 -1.442695, %v877_v26  ;;  %v878_v53 = vadd.f32 %v831_v30, %v2469_v28  ;;  %v880_v9 = vadd.f32 %v872_v17, %v2472_v29 }
 0x23e   :  { %v833_v7 = vpop.f32.mrf.mxu0  ;;  %v874_v11 = vpop.f32.mrf.mxu1 }
 0x23f   :  { %1974 = vpow2.f32 %v1777_v23  ;;  %v1778_v21 = vmul.f32 -1.442695, %v878_v53  ;;  %v1779_v22 = vmul.f32 -1.442695, %v880_v9 }
 0x240   :  { %v834_v35 = vpop.f32.mrf.mxu0  ;;  %v875_v16 = vpop.f32.mrf.mxu1 }
 0x241   :  { %1976 = vpow2.f32 %v1778_v21 }
 0x242   :  { %1978 = vtanh.f32 %v879_v27 }
 0x243   :  { %1980 = vpow2.f32 %v1779_v22 }
 0x24c   :  { %v1975_v18 = vpop.eup %1974 }
 0x24d   :  { %v884_v20 = vadd.f32 1.0, %v1975_v18 }
 0x24e   :  { %v1977_v24 = vpop.eup %1976 }
 0x24f   :  { %1982 = vrcp.f32 %v884_v20  ;;  %v890_v0 = vadd.f32 1.0, %v1977_v24  ;;  %v1979_v28 = vpop.eup %1978 }
 0x250   :  { %v1981_v14 = vpop.eup %1980 }
 0x251   :  { %1984 = vrcp.f32 %v890_v0  ;;  %v897_v26 = vadd.f32 1.0, %v1981_v14  ;;  %v2867_v0 = vld [vmem:[#allocation18_spill] sm:$0xff] }
 0x253   :  { %1986 = vrcp.f32 %v897_v26 }
 0x25c   :  { %v1983_v15 = vpop.eup %1982 }
 0x25d   :  { %v901_v12 = vmul.f32 %v1983_v15, %v1979_v28 }
 0x25e   :  { %v1985_v13 = vpop.eup %1984 }
 0x25f   :  { %v900_v30 = vmul.f32 %v1985_v13, %v2540_v8 }
 0x260   :  { %v1987_v25 = vpop.eup %1986 }
 0x261   :  { %v2582_v29 = vadd.f32 %v901_v12, %v900_v30 }
 0x263   :  { %1988 = vtanh.f32 %v2582_v29 }
 0x270   :  { %v1989_v19 = vpop.eup %1988 }
 0x271   :  { %v904_v17 = vmul.f32 %v1989_v19, %v1987_v25 }
 0x273   :  { %v905_v23 = vpack.c.bf16 %v904_v17, %v904_v17 }
 0x275   :  { %939 = vmatmul.mubr.bf16.vlgmr.msra.gmra.mxu0 %v905_v23  ;;  %980 = vmatmul.mubr.bf16.vlgmr.msra.gmra.mxu1 %v905_v23 }
 0x276   :  { %1018 = vmatpush1.bf16.msra.mxu0 %v2316_v36  ;;  %1059 = vmatpush1.bf16.msra.mxu1 %v2318_v37 }
 0x277   :  { %1019 = vmatprep.subr.bf16.mxu0 %v2322_v38  ;;  %1060 = vmatprep.subr.bf16.mxu1 %v2324_v39 }
 0x278   :  { %1049 = vmatprep.mubr.bf16.mxu0 %v2866_v10  ;;  %1090 = vmatprep.mubr.bf16.mxu1 %v2866_v10 }
 0x27a   :  { %1020 = vmatpush1.bf16.msra.mxu0 %v2326_v40  ;;  %1061 = vmatpush1.bf16.msra.mxu1 %v2330_v41 }
 0x27b   :  { %1021 = vmatprep.subr.bf16.mxu0 %v2334_v42  ;;  %1062 = vmatprep.subr.bf16.mxu1 %v2336_v43 }
 0x27e   :  { %1022 = vmatpush1.bf16.msra.mxu0 %v2340_v45  ;;  %1063 = vmatpush1.bf16.msra.mxu1 %v2342_v46 }
 0x27f   :  { %1023 = vmatprep.subr.bf16.mxu0 %v2346_v47  ;;  %1064 = vmatprep.subr.bf16.mxu1 %v2350_v48 }
 0x282   :  { %1024 = vmatpush1.bf16.msra.mxu0 %v2352_v49  ;;  %1065 = vmatpush1.bf16.msra.mxu1 %v2354_v50 }
 0x283   :  { %1025 = vmatprep.subr.bf16.mxu0 %v2358_v51  ;;  %1066 = vmatprep.subr.bf16.mxu1 %v2362_v52 }
 0x286   :  { %1026 = vmatpush1.bf16.msra.mxu0 %v2366_v54  ;;  %1067 = vmatpush1.bf16.msra.mxu1 %v2368_v55 }
 0x287   :  { %1027 = vmatprep.subr.bf16.mxu0 %v2370_v56  ;;  %1068 = vmatprep.subr.bf16.mxu1 %v2372_v57 }
 0x28a   :  { %1028 = vmatpush1.bf16.msra.mxu0 %v2380_v58  ;;  %1069 = vmatpush1.bf16.msra.mxu1 %v2382_v59 }
 0x28b   :  { %1029 = vmatprep.subr.bf16.mxu0 %v2386_v60  ;;  %1070 = vmatprep.subr.bf16.mxu1 %v2388_v61 }
 0x28e   :  { %1030 = vmatpush1.bf16.msra.mxu0 %v2394_v63  ;;  %1071 = vmatpush1.bf16.msra.mxu1 %v2396_v1 }
 0x28f   :  { %1031 = vmatprep.subr.bf16.mxu0 %v2400_v2  ;;  %1072 = vmatprep.subr.bf16.mxu1 %v2402_v3 }
 0x292   :  { %1032 = vmatpush1.bf16.msra.mxu0 %v2406_v4  ;;  %1073 = vmatpush1.bf16.msra.mxu1 %v2408_v5 }
 0x293   :  { %1128 = vmatprep.subr.bf16.mxu0 %v2312_v33  ;;  %1169 = vmatprep.subr.bf16.mxu1 %v2314_v34 }
 0x335   :  { %v940_v8 = vpop.f32.mrf.mxu0  ;;  %v981_v53 = vpop.f32.mrf.mxu1 }
 0x336   :  { %v988_v7 = vadd.f32 %v940_v8, %v2474_v32  ;;  %v990_v28 = vadd.f32 %v981_v53, %v2867_v0 }
 0x337   :  { %v942_v11 = vpop.f32.mrf.mxu0  ;;  %v983_v21 = vpop.f32.mrf.mxu1 }
 0x338   :  { %v1780_v35 = vmul.f32 -1.442695, %v988_v7  ;;  %v989_v16 = vadd.f32 %v942_v11, %v2479_v62  ;;  %v991_v24 = vadd.f32 %v983_v21, %v2482_v6 }
 0x339   :  { %v944_v9 = vpop.f32.mrf.mxu0  ;;  %v985_v27 = vpop.f32.mrf.mxu1 }
 0x33a   :  { %1990 = vpow2.f32 %v1780_v35  ;;  %v1781_v22 = vmul.f32 -1.442695, %v989_v16  ;;  %v1782_v14 = vmul.f32 -1.442695, %v991_v24  ;;  %v2868_v35 = vld [vmem:[#allocation19_spill] sm:$0xff] }
 0x33b   :  { %v945_v18 = vpop.f32.mrf.mxu0  ;;  %v986_v20 = vpop.f32.mrf.mxu1 }
 0x33c   :  { %1992 = vpow2.f32 %v1781_v22  ;;  %v2869_v18 = vld [vmem:[#allocation21_spill] sm:$0xff] }
 0x33d   :  { %1994 = vtanh.f32 %v990_v28 }
 0x33e   :  { %1996 = vpow2.f32 %v1782_v14 }
 0x347   :  { %v1991_v15 = vpop.eup %1990 }
 0x348   :  { %v995_v12 = vadd.f32 1.0, %v1991_v15 }
 0x349   :  { %v1993_v32 = vpop.eup %1992 }
 0x34a   :  { %1998 = vrcp.f32 %v995_v12  ;;  %v1001_v13 = vadd.f32 1.0, %v1993_v32  ;;  %v1995_v62 = vpop.eup %1994  ;;  %v2870_v12 = vld [vmem:[#allocation22_spill] sm:$0xff]  ;;  %v2871_v32 = vld [vmem:[#allocation20_spill] sm:$0xff] }
 0x34b   :  { %v1997_v26 = vpop.eup %1996 }
 0x34c   :  { %2000 = vrcp.f32 %v1001_v13  ;;  %v1008_v17 = vadd.f32 1.0, %v1997_v26 }
 0x34e   :  { %2002 = vrcp.f32 %v1008_v17 }
 0x357   :  { %v1999_v30 = vpop.eup %1998 }
 0x358   :  { %v1012_v25 = vmul.f32 %v1999_v30, %v1995_v62 }
 0x359   :  { %v2001_v19 = vpop.eup %2000 }
 0x35a   :  { %v1011_v23 = vmul.f32 %v2001_v19, %v2582_v29 }
 0x35b   :  { %v2003_v8 = vpop.eup %2002 }
 0x35c   :  { %v2624_v6 = vadd.f32 %v1012_v25, %v1011_v23 }
 0x35e   :  { %2004 = vtanh.f32 %v2624_v6 }
 0x36b   :  { %v2005_v53 = vpop.eup %2004 }
 0x36c   :  { %v1015_v7 = vmul.f32 %v2005_v53, %v2003_v8 }
 0x36e   :  { %v1016_v11 = vpack.c.bf16 %v1015_v7, %v1015_v7 }
 0x370   :  { %1050 = vmatmul.mubr.bf16.vlgmr.msra.gmra.mxu0 %v1016_v11  ;;  %1091 = vmatmul.mubr.bf16.vlgmr.msra.gmra.mxu1 %v1016_v11 }
 0x371   :  { %1129 = vmatpush1.bf16.msra.mxu0 %v2316_v36  ;;  %1170 = vmatpush1.bf16.msra.mxu1 %v2318_v37 }
 0x372   :  { %1130 = vmatprep.subr.bf16.mxu0 %v2322_v38  ;;  %1171 = vmatprep.subr.bf16.mxu1 %v2324_v39 }
 0x373   :  { %1160 = vmatprep.mubr.bf16.mxu0 %v2866_v10  ;;  %1201 = vmatprep.mubr.bf16.mxu1 %v2866_v10 }
 0x375   :  { %1131 = vmatpush1.bf16.msra.mxu0 %v2326_v40  ;;  %1172 = vmatpush1.bf16.msra.mxu1 %v2330_v41 }
 0x376   :  { %1132 = vmatprep.subr.bf16.mxu0 %v2334_v42  ;;  %1173 = vmatprep.subr.bf16.mxu1 %v2336_v43 }
 0x379   :  { %1133 = vmatpush1.bf16.msra.mxu0 %v2340_v45  ;;  %1174 = vmatpush1.bf16.msra.mxu1 %v2342_v46 }
 0x37a   :  { %1134 = vmatprep.subr.bf16.mxu0 %v2346_v47  ;;  %1175 = vmatprep.subr.bf16.mxu1 %v2350_v48 }
 0x37d   :  { %1135 = vmatpush1.bf16.msra.mxu0 %v2352_v49  ;;  %1176 = vmatpush1.bf16.msra.mxu1 %v2354_v50 }
 0x37e   :  { %1136 = vmatprep.subr.bf16.mxu0 %v2358_v51  ;;  %1177 = vmatprep.subr.bf16.mxu1 %v2362_v52 }
 0x381   :  { %1137 = vmatpush1.bf16.msra.mxu0 %v2366_v54  ;;  %1178 = vmatpush1.bf16.msra.mxu1 %v2368_v55 }
 0x382   :  { %1138 = vmatprep.subr.bf16.mxu0 %v2370_v56  ;;  %1179 = vmatprep.subr.bf16.mxu1 %v2372_v57 }
 0x385   :  { %1139 = vmatpush1.bf16.msra.mxu0 %v2380_v58  ;;  %1180 = vmatpush1.bf16.msra.mxu1 %v2382_v59 }
 0x386   :  { %1140 = vmatprep.subr.bf16.mxu0 %v2386_v60  ;;  %1181 = vmatprep.subr.bf16.mxu1 %v2388_v61 }
 0x389   :  { %1141 = vmatpush1.bf16.msra.mxu0 %v2394_v63  ;;  %1182 = vmatpush1.bf16.msra.mxu1 %v2396_v1 }
 0x38a   :  { %1142 = vmatprep.subr.bf16.mxu0 %v2400_v2  ;;  %1183 = vmatprep.subr.bf16.mxu1 %v2402_v3 }
 0x38d   :  { %1143 = vmatpush1.bf16.msra.mxu0 %v2406_v4  ;;  %1184 = vmatpush1.bf16.msra.mxu1 %v2408_v5 }
 0x38e   :  { %1239 = vmatprep.subr.bf16.mxu0 %v2312_v33  ;;  %1280 = vmatprep.subr.bf16.mxu1 %v2314_v34 }
 0x430   :  { %v1051_v29 = vpop.f32.mrf.mxu0  ;;  %v1092_v21 = vpop.f32.mrf.mxu1 }
 0x431   :  { %v1099_v16 = vadd.f32 %v1051_v29, %v2868_v35  ;;  %v1101_v34 = vadd.f32 %v1092_v21, %v2871_v32 }
 0x432   :  { %v1053_v9 = vpop.f32.mrf.mxu0  ;;  %v1094_v27 = vpop.f32.mrf.mxu1 }
 0x433   :  { %v1783_v22 = vmul.f32 -1.442695, %v1099_v16  ;;  %v1100_v20 = vadd.f32 %v1053_v9, %v2869_v18  ;;  %v1102_v33 = vadd.f32 %v1094_v27, %v2870_v12 }
 0x434   :  { %v1055_v24 = vpop.f32.mrf.mxu0  ;;  %v1096_v0 = vpop.f32.mrf.mxu1 }
 0x435   :  { %2006 = vpow2.f32 %v1783_v22  ;;  %v1784_v28 = vmul.f32 -1.442695, %v1100_v20  ;;  %v1785_v13 = vmul.f32 -1.442695, %v1102_v33 }
 0x436   :  { %v1056_v14 = vpop.f32.mrf.mxu0  ;;  %v1097_v15 = vpop.f32.mrf.mxu1 }
 0x437   :  { %2008 = vpow2.f32 %v1784_v28 }
 0x438   :  { %2010 = vtanh.f32 %v1101_v34 }
 0x439   :  { %2012 = vpow2.f32 %v1785_v13 }
 0x442   :  { %v2007_v62 = vpop.eup %2006 }
 0x443   :  { %v1106_v26 = vadd.f32 1.0, %v2007_v62 }
 0x444   :  { %v2009_v30 = vpop.eup %2008 }
 0x445   :  { %2014 = vrcp.f32 %v1106_v26  ;;  %v1112_v25 = vadd.f32 1.0, %v2009_v30  ;;  %v2011_v19 = vpop.eup %2010  ;;  %v2715_v30 = vld [vmem:[#allocation10 + $0xe0] ss:$16 sps:$4 sm:$0xff]  }
 0x446   :  { %v2013_v17 = vpop.eup %2012 }
 0x447   :  { %2016 = vrcp.f32 %v1112_v25  ;;  %v1119_v7 = vadd.f32 1.0, %v2013_v17  ;;  %v2718_v25 = vld [vmem:[#allocation10 + $0xe8] ss:$16 sps:$4 sm:$0xff]   ;;  %v2724_v17 = vld [vmem:[#allocation10 + $0xcc] ss:$16 sps:$4 sm:$0xff]  }
 0x449   :  { %2018 = vrcp.f32 %v1119_v7  ;;  %v2738_v7 = vld [vmem:[#allocation10 + $0xac] ss:$16 sps:$4 sm:$0xff]  }
 0x452   :  { %v2015_v23 = vpop.eup %2014 }
 0x453   :  { %v1123_v8 = vmul.f32 %v2015_v23, %v2011_v19  ;;  %v2721_v19 = vld [vmem:[#allocation10 + $0xc4] ss:$16 sps:$4 sm:$0xff]   ;;  %v2729_v23 = vld [vmem:[#allocation10 + $0xc0] ss:$16 sps:$4 sm:$0xff]  }
 0x454   :  { %v2017_v53 = vpop.eup %2016 }
 0x455   :  { %v1122_v11 = vmul.f32 %v2017_v53, %v2624_v6  ;;  %v2735_v53 = vld [vmem:[#allocation10 + $0xa4] ss:$16 sps:$4 sm:$0xff]  }
 0x456   :  { %v2019_v21 = vpop.eup %2018 }
 0x457   :  { %v2666_v29 = vadd.f32 %v1123_v8, %v1122_v11  ;;  %v2732_v8 = vld [vmem:[#allocation10 + $0xc8] ss:$16 sps:$4 sm:$0xff]   ;;  %v2741_v11 = vld [vmem:[#allocation10 + $0xa0] ss:$16 sps:$4 sm:$0xff]  }
 0x459   :  { %2020 = vtanh.f32 %v2666_v29 }
 0x466   :  { %v2021_v35 = vpop.eup %2020 }
 0x467   :  { %v1126_v16 = vmul.f32 %v2021_v35, %v2019_v21  ;;  %v2747_v21 = vld [vmem:[#allocation10 + $0x84] ss:$16 sps:$4 sm:$0xff]   ;;  %v2750_v35 = vld [vmem:[#allocation10 + $0x8c] ss:$16 sps:$4 sm:$0xff]  }
 0x469   :  { %v1127_v9 = vpack.c.bf16 %v1126_v16, %v1126_v16  ;;  %v2753_v16 = vld [vmem:[#allocation10 + $0x80] ss:$16 sps:$4 sm:$0xff]  }
 0x46b   :  { %1161 = vmatmul.mubr.bf16.vlgmr.msra.gmra.mxu0 %v1127_v9  ;;  %1202 = vmatmul.mubr.bf16.vlgmr.msra.gmra.mxu1 %v1127_v9  ;;  %v2756_v9 = vld [vmem:[#allocation10 + $0x88] ss:$16 sps:$4 sm:$0xff]  }
 0x46c   :  { %1240 = vmatpush1.bf16.msra.mxu0 %v2316_v36  ;;  %1281 = vmatpush1.bf16.msra.mxu1 %v2318_v37  ;;  %v2701_v36 = vld [vmem:[#allocation10 + $0xe4] ss:$16 sps:$4 sm:$0xff]   ;;  %v2704_v37 = vld [vmem:[#allocation10 + $0xec] ss:$16 sps:$4 sm:$0xff]  }
 0x46d   :  { %1241 = vmatprep.subr.bf16.mxu0 %v2322_v38  ;;  %1282 = vmatprep.subr.bf16.mxu1 %v2324_v39 }
 0x46e   :  { %1271 = vmatprep.mubr.bf16.mxu0 %v2866_v10  ;;  %1312 = vmatprep.mubr.bf16.mxu1 %v2866_v10 }
 0x470   :  { %1242 = vmatpush1.bf16.msra.mxu0 %v2326_v40  ;;  %1283 = vmatpush1.bf16.msra.mxu1 %v2330_v41  ;;  %v2872_v40 = vld [vmem:[#allocation23_spill] sm:$0xff] }
 0x471   :  { %1243 = vmatprep.subr.bf16.mxu0 %v2334_v42  ;;  %1284 = vmatprep.subr.bf16.mxu1 %v2336_v43 }
 0x474   :  { %1244 = vmatpush1.bf16.msra.mxu0 %v2340_v45  ;;  %1285 = vmatpush1.bf16.msra.mxu1 %v2342_v46  ;;  %v2873_v46 = vld [vmem:[#allocation25_spill] sm:$0xff] }
 0x475   :  { %1245 = vmatprep.subr.bf16.mxu0 %v2346_v47  ;;  %1286 = vmatprep.subr.bf16.mxu1 %v2350_v48 }
 0x478   :  { %1246 = vmatpush1.bf16.msra.mxu0 %v2352_v49  ;;  %1287 = vmatpush1.bf16.msra.mxu1 %v2354_v50 }
 0x479   :  { %1247 = vmatprep.subr.bf16.mxu0 %v2358_v51  ;;  %1288 = vmatprep.subr.bf16.mxu1 %v2362_v52 }
 0x47c   :  { %1248 = vmatpush1.bf16.msra.mxu0 %v2366_v54  ;;  %1289 = vmatpush1.bf16.msra.mxu1 %v2368_v55  ;;  %v2874_v54 = vld [vmem:[#allocation26_spill] sm:$0xff] }
 0x47d   :  { %1249 = vmatprep.subr.bf16.mxu0 %v2370_v56  ;;  %1290 = vmatprep.subr.bf16.mxu1 %v2372_v57  ;;  %v2875_v56 = vld [vmem:[#allocation24_spill] sm:$0xff] }
 0x480   :  { %1250 = vmatpush1.bf16.msra.mxu0 %v2380_v58  ;;  %1291 = vmatpush1.bf16.msra.mxu1 %v2382_v59 }
 0x481   :  { %1251 = vmatprep.subr.bf16.mxu0 %v2386_v60  ;;  %1292 = vmatprep.subr.bf16.mxu1 %v2388_v61 }
 0x484   :  { %1252 = vmatpush1.bf16.msra.mxu0 %v2394_v63  ;;  %1293 = vmatpush1.bf16.msra.mxu1 %v2396_v1 }
 0x485   :  { %1253 = vmatprep.subr.bf16.mxu0 %v2400_v2  ;;  %1294 = vmatprep.subr.bf16.mxu1 %v2402_v3 }
 0x488   :  { %1254 = vmatpush1.bf16.msra.mxu0 %v2406_v4  ;;  %1295 = vmatpush1.bf16.msra.mxu1 %v2408_v5 }
 0x489   :  { %1350 = vmatprep.subr.bf16.mxu0 %v2701_v36  ;;  %1391 = vmatprep.subr.bf16.mxu1 %v2704_v37 }
 0x52b   :  { %v1162_v38 = vpop.f32.mrf.mxu0  ;;  %v1203_v39 = vpop.f32.mrf.mxu1 }
 0x52c   :  { %v1210_v41 = vadd.f32 %v1162_v38, %v2872_v40  ;;  %v1212_v57 = vadd.f32 %v1203_v39, %v2875_v56  ;;  %v2759_v38 = vld [vmem:[#allocation10 + $0x64] ss:$16 sps:$4 sm:$0xff]   ;;  %v2762_v39 = vld [vmem:[#allocation10 + $0x6c] ss:$16 sps:$4 sm:$0xff]   ;;  %v2765_v40 = vld [vmem:[#allocation10 + $0x60] ss:$16 sps:$4 sm:$0xff]  }
 0x52d   :  { %v1164_v42 = vpop.f32.mrf.mxu0  ;;  %v1205_v43 = vpop.f32.mrf.mxu1 }
 0x52e   :  { %v1786_v45 = vmul.f32 -1.442695, %v1210_v41  ;;  %v1211_v47 = vadd.f32 %v1164_v42, %v2873_v46  ;;  %v1213_v55 = vadd.f32 %v1205_v43, %v2874_v54  ;;  %v2768_v41 = vld [vmem:[#allocation10 + $0x68] ss:$16 sps:$4 sm:$0xff]   ;;  %v2771_v42 = vld [vmem:[#allocation10 + $0x44] ss:$16 sps:$4 sm:$0xff]  }
 0x52f   :  { %v1166_v48 = vpop.f32.mrf.mxu0  ;;  %v1207_v49 = vpop.f32.mrf.mxu1  ;;  %v2774_v43 = vld [vmem:[#allocation10 + $0x4c] ss:$16 sps:$4 sm:$0xff]  }
 0x530   :  { %2022 = vpow2.f32 %v1786_v45  ;;  %v1787_v50 = vmul.f32 -1.442695, %v1211_v47  ;;  %v1788_v6 = vmul.f32 -1.442695, %v1213_v55 }
 0x531   :  { %v1167_v51 = vpop.f32.mrf.mxu0  ;;  %v1208_v52 = vpop.f32.mrf.mxu1 }
 0x532   :  { %2024 = vpow2.f32 %v1787_v50  ;;  %v2879_v50 = vld [vmem:[#allocation28_spill] sm:$0xff] }
 0x533   :  { %2026 = vtanh.f32 %v1212_v57 }
 0x534   :  { %2028 = vpow2.f32 %v1788_v6 }
 0x53d   :  { %v2023_v27 = vpop.eup %2022 }
 0x53e   :  { %v1217_v22 = vadd.f32 1.0, %v2023_v27 }
 0x53f   :  { %v2025_v18 = vpop.eup %2024 }
 0x540   :  { %2030 = vrcp.f32 %v1217_v22  ;;  %v1223_v20 = vadd.f32 1.0, %v2025_v18  ;;  %v2027_v24 = vpop.eup %2026 }
 0x541   :  { %v2029_v0 = vpop.eup %2028 }
 0x542   :  { %2032 = vrcp.f32 %v1223_v20  ;;  %v1230_v12 = vadd.f32 1.0, %v2029_v0 }
 0x544   :  { %2034 = vrcp.f32 %v1230_v12 }
 0x54d   :  { %v2031_v28 = vpop.eup %2030 }
 0x54e   :  { %v1234_v14 = vmul.f32 %v2031_v28, %v2027_v24 }
 0x54f   :  { %v2033_v15 = vpop.eup %2032 }
 0x550   :  { %v1233_v33 = vmul.f32 %v2033_v15, %v2666_v29  ;;  %v2744_v29 = vld [vmem:[#allocation10 + $0xa8] ss:$16 sps:$4 sm:$0xff]  }
 0x551   :  { %v2035_v34 = vpop.eup %2034 }
 0x552   :  { %v2712_v32 = vadd.f32 %v1234_v14, %v1233_v33  ;;  %v2109_v33 = vld [vmem:[#allocation10 + $0x48] ss:$16 sps:$4 sm:$0xff]  }
 0x554   :  { %2036 = vtanh.f32 %v2712_v32 }
 0x561   :  { %v2037_v13 = vpop.eup %2036 }
 0x562   :  { %v1237_v62 = vmul.f32 %v2037_v13, %v2035_v34  ;;  %v2111_v34 = vld [vmem:[#allocation10 + $0x2c] ss:$16 sps:$4 sm:$0xff]   ;;  %v2112_v13 = vld [vmem:[#allocation10 + $0x20] ss:$16 sps:$4 sm:$0xff]  }
 0x564   :  { %v1238_v26 = vpack.c.bf16 %v1237_v62, %v1237_v62  ;;  %v2113_v62 = vld [vmem:[#allocation10 + $0x28] ss:$16 sps:$4 sm:$0xff]  }
 0x566   :  { %1272 = vmatmul.mubr.bf16.vlgmr.msra.gmra.mxu0 %v1238_v26  ;;  %1313 = vmatmul.mubr.bf16.vlgmr.msra.gmra.mxu1 %v1238_v26  ;;  %v2114_v26 = vld [vmem:[#allocation10 + $0x4] ss:$16 sps:$4 sm:$0xff]  }
 0x567   :  { %1351 = vmatpush1.bf16.msra.mxu0 %v2715_v30  ;;  %1392 = vmatpush1.bf16.msra.mxu1 %v2718_v25 }
 0x568   :  { %1352 = vmatprep.subr.bf16.mxu0 %v2721_v19  ;;  %1393 = vmatprep.subr.bf16.mxu1 %v2724_v17 }
 0x569   :  { %1382 = vmatprep.mubr.bf16.mxu0 %v2866_v10  ;;  %1423 = vmatprep.mubr.bf16.mxu1 %v2866_v10 }
 0x56b   :  { %1353 = vmatpush1.bf16.msra.mxu0 %v2729_v23  ;;  %1394 = vmatpush1.bf16.msra.mxu1 %v2732_v8 }
 0x56c   :  { %1354 = vmatprep.subr.bf16.mxu0 %v2735_v53  ;;  %1395 = vmatprep.subr.bf16.mxu1 %v2738_v7 }
 0x56f   :  { %1355 = vmatpush1.bf16.msra.mxu0 %v2741_v11  ;;  %1396 = vmatpush1.bf16.msra.mxu1 %v2744_v29 }
 0x570   :  { %1356 = vmatprep.subr.bf16.mxu0 %v2747_v21  ;;  %1397 = vmatprep.subr.bf16.mxu1 %v2750_v35 }
 0x573   :  { %1357 = vmatpush1.bf16.msra.mxu0 %v2753_v16  ;;  %1398 = vmatpush1.bf16.msra.mxu1 %v2756_v9 }
 0x574   :  { %1358 = vmatprep.subr.bf16.mxu0 %v2759_v38  ;;  %1399 = vmatprep.subr.bf16.mxu1 %v2762_v39 }
 0x577   :  { %1359 = vmatpush1.bf16.msra.mxu0 %v2765_v40  ;;  %1400 = vmatpush1.bf16.msra.mxu1 %v2768_v41 }
 0x578   :  { %1360 = vmatprep.subr.bf16.mxu0 %v2771_v42  ;;  %1401 = vmatprep.subr.bf16.mxu1 %v2774_v43 }
 0x57b   :  { %1361 = vmatpush1.bf16.msra.mxu0 %v2380_v58  ;;  %1402 = vmatpush1.bf16.msra.mxu1 %v2382_v59 }
 0x57c   :  { %1362 = vmatprep.subr.bf16.mxu0 %v2386_v60  ;;  %1403 = vmatprep.subr.bf16.mxu1 %v2388_v61  ;;  %v2876_v60 = vld [vmem:[#allocation27_spill] sm:$0xff] }
 0x57f   :  { %1363 = vmatpush1.bf16.msra.mxu0 %v2394_v63  ;;  %1404 = vmatpush1.bf16.msra.mxu1 %v2396_v1  ;;  %v2877_v1 = vld [vmem:[#allocation29_spill] sm:$0xff] }
 0x580   :  { %1364 = vmatprep.subr.bf16.mxu0 %v2400_v2  ;;  %1405 = vmatprep.subr.bf16.mxu1 %v2402_v3 }
 0x583   :  { %1365 = vmatpush1.bf16.msra.mxu0 %v2406_v4  ;;  %1406 = vmatpush1.bf16.msra.mxu1 %v2408_v5  ;;  %v2878_v5 = vld [vmem:[#allocation30_spill] sm:$0xff] }
 0x584   :  { %1461 = vmatprep.subr.bf16.mxu0 %v2701_v36  ;;  %1502 = vmatprep.subr.bf16.mxu1 %v2704_v37 }
 0x626   :  { %v1273_v58 = vpop.f32.mrf.mxu0  ;;  %v1314_v59 = vpop.f32.mrf.mxu1 }
 0x627   :  { %v1321_v61 = vadd.f32 %v1273_v58, %v2876_v60  ;;  %v1323_v37 = vadd.f32 %v1314_v59, %v2879_v50 }
 0x628   :  { %v1275_v45 = vpop.f32.mrf.mxu0  ;;  %v1316_v63 = vpop.f32.mrf.mxu1 }
 0x629   :  { %v1789_v46 = vmul.f32 -1.442695, %v1321_v61  ;;  %v1322_v47 = vadd.f32 %v1275_v45, %v2877_v1  ;;  %v1324_v36 = vadd.f32 %v1316_v63, %v2878_v5 }
 0x62a   :  { %v1277_v2 = vpop.f32.mrf.mxu0  ;;  %v1318_v48 = vpop.f32.mrf.mxu1 }
 0x62b   :  { %2038 = vpow2.f32 %v1789_v46  ;;  %v1790_v3 = vmul.f32 -1.442695, %v1322_v47  ;;  %v1791_v51 = vmul.f32 -1.442695, %v1324_v36 }
 0x62c   :  { %v1278_v4 = vpop.f32.mrf.mxu0  ;;  %v1319_v49 = vpop.f32.mrf.mxu1 }
 0x62d   :  { %2040 = vpow2.f32 %v1790_v3 }
 0x62e   :  { %2042 = vtanh.f32 %v1323_v37 }
 0x62f   :  { %2044 = vpow2.f32 %v1791_v51  ;;  %v1950_v51 = vld [vmem:[#allocation12 + $0x38] sm:$0xff]  }
 0x638   :  { %v2039_v52 = vpop.eup %2038 }
 0x639   :  { %v1328_v54 = vadd.f32 1.0, %v2039_v52  ;;  %v2257_v52 = vmov 0.0  }
 0x63a   :  { %v2041_v55 = vpop.eup %2040 }
 0x63b   :  { %2046 = vrcp.f32 %v1328_v54  ;;  %v1334_v56 = vadd.f32 1.0, %v2041_v55  ;;  %v2043_v57 = vpop.eup %2042  ;;  %v1951_v54 = vld [vmem:[#allocation12 + $0x30] sm:$0xff]   ;;  %v1952_v55 = vld [vmem:[#allocation12 + $0x28] sm:$0xff]  }
 0x63c   :  { %v2045_v6 = vpop.eup %2044 }
 0x63d   :  { %2048 = vrcp.f32 %v1334_v56  ;;  %v1341_v20 = vadd.f32 1.0, %v2045_v6  ;;  %v1953_v56 = vld [vmem:[#allocation12 + $0x20] sm:$0xff]   ;;  %v1955_v6 = vld [vmem:[#allocation12 + $0x10] sm:$0xff]  }
 0x63f   :  { %2050 = vrcp.f32 %v1341_v20 }
 0x648   :  { %v2047_v27 = vpop.eup %2046 }
 0x649   :  { %v1345_v22 = vmul.f32 %v2047_v27, %v2043_v57  ;;  %v1954_v57 = vld [vmem:[#allocation12 + $0x18] sm:$0xff]   ;;  %v1956_v27 = vld [vmem:[#allocation12 + $0x8] sm:$0xff]  }
 0x64a   :  { %v2049_v18 = vpop.eup %2048 }
 0x64b   :  { %v1344_v24 = vmul.f32 %v2049_v18, %v2712_v32  ;;  %v2110_v32 = vld [vmem:[#allocation10 + $0x24] ss:$16 sps:$4 sm:$0xff]  }
 0x64c   :  { %v2051_v28 = vpop.eup %2050 }
 0x64d   :  { %v2794_v0 = vadd.f32 %v1345_v22, %v1344_v24  ;;  %v1957_v22 = vld [vmem:[#allocation12] sm:$0xff]   ;;  %v2884_v24 = vld [vmem:[#allocation35_spill] sm:$0xff] }
 0x64f   :  { %2052 = vtanh.f32 %v2794_v0 }
 0x65c   :  { %v2053_v14 = vpop.eup %2052 }
 0x65d   :  { %v1348_v15 = vmul.f32 %v2053_v14, %v2051_v28 }
 0x65f   :  { %v1349_v12 = vpack.c.bf16 %v1348_v15, %v1348_v15 }
 0x661   :  { %1383 = vmatmul.mubr.bf16.vlgmr.msra.gmra.mxu0 %v1349_v12  ;;  %1424 = vmatmul.mubr.bf16.vlgmr.msra.gmra.mxu1 %v1349_v12 }
 0x662   :  { %1462 = vmatpush1.bf16.msra.mxu0 %v2715_v30  ;;  %1503 = vmatpush1.bf16.msra.mxu1 %v2718_v25  ;;  %v2115_v30 = vld [vmem:[#allocation10 + $0xc] ss:$16 sps:$4 sm:$0xff]   ;;  %v2116_v25 = vld [vmem:[#allocation10] ss:$16 sps:$4 sm:$0xff]  }
 0x663   :  { %1463 = vmatprep.subr.bf16.mxu0 %v2721_v19  ;;  %1504 = vmatprep.subr.bf16.mxu1 %v2724_v17  ;;  %v2117_v19 = vld [vmem:[#allocation10 + $0x8] ss:$16 sps:$4 sm:$0xff]  }
 0x664   :  { %1493 = vmatprep.mubr.bf16.mxu0 %v2866_v10  ;;  %1534 = vmatprep.mubr.bf16.mxu1 %v2866_v10  ;;  %v2108_v10 = vld [vmem:[#allocation10 + $0x40] ss:$16 sps:$4 sm:$0xff]  }
 0x666   :  { %1464 = vmatpush1.bf16.msra.mxu0 %v2729_v23  ;;  %1505 = vmatpush1.bf16.msra.mxu1 %v2732_v8  ;;  %v2880_v8 = vld [vmem:[#allocation31_spill] sm:$0xff] }
 0x667   :  { %1465 = vmatprep.subr.bf16.mxu0 %v2735_v53  ;;  %1506 = vmatprep.subr.bf16.mxu1 %v2738_v7 }
 0x66a   :  { %1466 = vmatpush1.bf16.msra.mxu0 %v2741_v11  ;;  %1507 = vmatpush1.bf16.msra.mxu1 %v2744_v29 }
 0x66b   :  { %1467 = vmatprep.subr.bf16.mxu0 %v2747_v21  ;;  %1508 = vmatprep.subr.bf16.mxu1 %v2750_v35  ;;  %v2881_v21 = vld [vmem:[#allocation33_spill] sm:$0xff] }
 0x66e   :  { %1468 = vmatpush1.bf16.msra.mxu0 %v2753_v16  ;;  %1509 = vmatpush1.bf16.msra.mxu1 %v2756_v9 }
 0x66f   :  { %1469 = vmatprep.subr.bf16.mxu0 %v2759_v38  ;;  %1510 = vmatprep.subr.bf16.mxu1 %v2762_v39 }
 0x672   :  { %1470 = vmatpush1.bf16.msra.mxu0 %v2765_v40  ;;  %1511 = vmatpush1.bf16.msra.mxu1 %v2768_v41  ;;  %v2882_v41 = vld [vmem:[#allocation34_spill] sm:$0xff] }
 0x673   :  { %1471 = vmatprep.subr.bf16.mxu0 %v2771_v42  ;;  %1512 = vmatprep.subr.bf16.mxu1 %v2774_v43  ;;  %v2883_v43 = vld [vmem:[#allocation32_spill] sm:$0xff] }
 0x676   :  { %1472 = vmatpush1.bf16.msra.mxu0 %v2108_v10  ;;  %1513 = vmatpush1.bf16.msra.mxu1 %v2109_v33 }
 0x677   :  { %1473 = vmatprep.subr.bf16.mxu0 %v2110_v32  ;;  %1514 = vmatprep.subr.bf16.mxu1 %v2111_v34 }
 0x67a   :  { %1474 = vmatpush1.bf16.msra.mxu0 %v2112_v13  ;;  %1515 = vmatpush1.bf16.msra.mxu1 %v2113_v62 }
 0x67b   :  { %1475 = vmatprep.subr.bf16.mxu0 %v2114_v26  ;;  %1516 = vmatprep.subr.bf16.mxu1 %v2115_v30  ;;  %v2885_v26 = vld [vmem:[#allocation36_spill] sm:$0xff] }
 0x67e   :  { %1476 = vmatpush1.bf16.msra.mxu0 %v2116_v25  ;;  %1517 = vmatpush1.bf16.msra.mxu1 %v2117_v19 }
 0x67f   :  { %1816 = vmatprep.subr.bf16.mxu0 %v2257_v52 }
 0x721   :  { %v1384_v17 = vpop.f32.mrf.mxu0  ;;  %v1425_v23 = vpop.f32.mrf.mxu1 }
 0x722   :  { %v1432_v53 = vadd.f32 %v1384_v17, %v2880_v8  ;;  %v1434_v58 = vadd.f32 %v1425_v23, %v2883_v43 }
 0x723   :  { %v1386_v7 = vpop.f32.mrf.mxu0  ;;  %v1427_v11 = vpop.f32.mrf.mxu1 }
 0x724   :  { %v1792_v29 = vmul.f32 -1.442695, %v1432_v53  ;;  %v1433_v35 = vadd.f32 %v1386_v7, %v2881_v21  ;;  %v1435_v42 = vadd.f32 %v1427_v11, %v2882_v41 }
 0x725   :  { %v1388_v16 = vpop.f32.mrf.mxu0  ;;  %v1429_v9 = vpop.f32.mrf.mxu1 }
 0x726   :  { %2054 = vpow2.f32 %v1792_v29  ;;  %v1793_v38 = vmul.f32 -1.442695, %v1433_v35  ;;  %v1794_v59 = vmul.f32 -1.442695, %v1435_v42 }
 0x727   :  { %v1389_v39 = vpop.f32.mrf.mxu0  ;;  %v1430_v40 = vpop.f32.mrf.mxu1 }
 0x728   :  { %2056 = vpow2.f32 %v1793_v38  ;;  %v1798_v40 = vld [vmem:[%s2843_s5] ss:$0 sm:$0xff] }
 0x729   :  { %2058 = vtanh.f32 %v1434_v58 }
 0x72a   :  { %2060 = vpow2.f32 %v1794_v59 }
 0x733   :  { %v2055_v60 = vpop.eup %2054 }
 0x734   :  { %v1439_v61 = vadd.f32 1.0, %v2055_v60 }
 0x735   :  { %v2057_v45 = vpop.eup %2056 }
 0x736   :  { %2062 = vrcp.f32 %v1439_v61  ;;  %v1445_v63 = vadd.f32 1.0, %v2057_v45  ;;  %v2059_v46 = vpop.eup %2058 }
 0x737   :  { %v2061_v1 = vpop.eup %2060 }
 0x738   :  { %2064 = vrcp.f32 %v1445_v63  ;;  %v1452_v3 = vadd.f32 1.0, %v2061_v1 }
 0x73a   :  { %2066 = vrcp.f32 %v1452_v3 }
 0x743   :  { %v2063_v47 = vpop.eup %2062 }
 0x744   :  { %v1456_v2 = vmul.f32 %v2063_v47, %v2059_v46 }
 0x745   :  { %v2065_v48 = vpop.eup %2064 }
 0x746   :  { %v1455_v4 = vmul.f32 %v2065_v48, %v2794_v0 }
 0x747   :  { %v2067_v5 = vpop.eup %2066 }
 0x748   :  { %v2824_v49 = vadd.f32 %v1456_v2, %v1455_v4 }
 0x74a   :  { %2068 = vtanh.f32 %v2824_v49 }
 0x757   :  { %v2069_v36 = vpop.eup %2068 }
 0x758   :  { %v1459_v50 = vmul.f32 %v2069_v36, %v2067_v5 }
 0x75a   :  { %v1460_v37 = vpack.c.bf16 %v1459_v50, %v1459_v50 }
 0x75c   :  { %1494 = vmatmul.mubr.bf16.vlgmr.msra.gmra.mxu0 %v1460_v37  ;;  %1535 = vmatmul.mubr.bf16.vlgmr.msra.gmra.mxu1 %v1460_v37 }
 0x75d   :  { %1817 = vmatpush3.bf16.msra.mxu0 %v1950_v51  ;;  %1832 = vmatprep.mubr.msk.bf16.mxu0 %vm2258_vm0, %v2257_v52 }
 0x75e   :  { %1818 = vmatprep.subr.bf16.mxu0 %v2257_v52 }
 0x761   :  { %1819 = vmatpush3.bf16.msra.mxu0 %v1951_v54 }
 0x762   :  { %1820 = vmatprep.subr.bf16.mxu0 %v2257_v52 }
 0x765   :  { %1821 = vmatpush3.bf16.msra.mxu0 %v1952_v55 }
 0x766   :  { %1822 = vmatprep.subr.bf16.mxu0 %v2257_v52 }
 0x769   :  { %1823 = vmatpush3.bf16.msra.mxu0 %v1953_v56 }
 0x76a   :  { %1824 = vmatprep.subr.bf16.mxu0 %v2257_v52 }
 0x76d   :  { %1825 = vmatpush3.bf16.msra.mxu0 %v1954_v57 }
 0x76e   :  { %1826 = vmatprep.subr.bf16.mxu0 %v2257_v52 }
 0x771   :  { %1827 = vmatpush3.bf16.msra.mxu0 %v1955_v6 }
 0x772   :  { %1828 = vmatprep.subr.bf16.mxu0 %v2257_v52 }
 0x775   :  { %1829 = vmatpush3.bf16.msra.mxu0 %v1956_v27 }
 0x776   :  { %1830 = vmatprep.subr.bf16.mxu0 %v2257_v52 }
 0x779   :  { %1831 = vmatpush3.bf16.msra.mxu0 %v1957_v22 }
 0x81c   :  { %v1495_v18 = vpop.f32.mrf.mxu0  ;;  %v1536_v20 = vpop.f32.mrf.mxu1 }
 0x81d   :  { %v1543_v0 = vadd.f32 %v1495_v18, %v2884_v24  ;;  %v1545_v30 = vadd.f32 %v1536_v20, %v2885_v26 }
 0x81e   :  { %v1497_v28 = vpop.f32.mrf.mxu0  ;;  %v1538_v14 = vpop.f32.mrf.mxu1 }
 0x81f   :  { %v1795_v15 = vmul.f32 -1.442695, %v1543_v0  ;;  %v1544_v12 = vadd.f32 %v1497_v28, %v2530_v31  ;;  %v1546_v62 = vadd.f32 %v1538_v14, %v2533_v44 }
 0x820   :  { %v1499_v10 = vpop.f32.mrf.mxu0  ;;  %v1540_v33 = vpop.f32.mrf.mxu1 }
 0x821   :  { %2070 = vpow2.f32 %v1795_v15  ;;  %v1796_v32 = vmul.f32 -1.442695, %v1544_v12  ;;  %v1797_v25 = vmul.f32 -1.442695, %v1546_v62 }
 0x822   :  { %v1500_v34 = vpop.f32.mrf.mxu0  ;;  %v1541_v13 = vpop.f32.mrf.mxu1 }
 0x823   :  { %2072 = vpow2.f32 %v1796_v32 }
 0x824   :  { %2074 = vtanh.f32 %v1545_v30 }
 0x825   :  { %2076 = vpow2.f32 %v1797_v25 }
 0x82e   :  { %v2071_v19 = vpop.eup %2070 }
 0x82f   :  { %v1550_v17 = vadd.f32 1.0, %v2071_v19 }
 0x830   :  { %v2073_v23 = vpop.eup %2072 }
 0x831   :  { %2078 = vrcp.f32 %v1550_v17  ;;  %v1556_v8 = vadd.f32 1.0, %v2073_v23  ;;  %v2075_v31 = vpop.eup %2074 }
 0x832   :  { %v2077_v53 = vpop.eup %2076 }
 0x833   :  { %2080 = vrcp.f32 %v1556_v8  ;;  %v1563_v21 = vadd.f32 1.0, %v2077_v53 }
 0x835   :  { %2082 = vrcp.f32 %v1563_v21 }
 0x83e   :  { %v2079_v7 = vpop.eup %2078 }
 0x83f   :  { %v1567_v11 = vmul.f32 %v2079_v7, %v2075_v31 }
 0x840   :  { %v2081_v29 = vpop.eup %2080 }
 0x841   :  { %v1566_v35 = vmul.f32 %v2081_v29, %v2824_v49 }
 0x842   :  { %v2083_v16 = vpop.eup %2082 }
 0x843   :  { %v1568_v44 = vadd.f32 %v1567_v11, %v1566_v35 }
 0x845   :  { %2084 = vtanh.f32 %v1568_v44 }
 0x852   :  { %v2085_v9 = vpop.eup %2084 }
 0x853   :  { %v1570_v38 = vmul.f32 %v2085_v9, %v2083_v16 }
 0x855   :  { %v1576_v39 = vpack.c.bf16 %v1570_v38, %v1570_v38 }
 0x857   :  { %1833 = vmatmul.mubr.bf16.vlgmr.msra.gmra.mxu0 %v1576_v39 }
 0x917   :  { %v1682_v41 = vpop.f32.mrf.mxu0 }
 0x918   :  { %v1683_v42 = vadd.f32 %v1798_v40, %v1682_v41 }
 0x919   :  { %v1834_v43 = vpop.f32.mrf.mxu0 }
 0x91a   :  { %1688 = vst [vmem:[#allocation13] sm:$0xff] %v1683_v42 }
 0x91b   :  { %v1685_v58 = vpop.f32.mrf.mxu0 }
 0x91c   :  { %2229 = shalt.err (!%p2226_p1)
}
 0x91d   :  { %1698 = dma.vmem_to_hbm [thread:$0]  %s1696_s24, 128, %s2844_s6, [#allocation6]   ;;  %v1835_v59 = vpop.f32.mrf.mxu0 }
 0x91e   :  { %2244 = dma.done.wait [#allocation6], 128  }
 0x91f   :  { %2245 = vsyncadd [#allocation6], 4294967168 }
 0x920   :  { %1702 = vsyncpa [#allocation5], 1 }
 0x921   :  { %1703 = vsyncpa [#allocation8], 1 }
 0x922   :  { %1704 = vsyncpa [#allocation11], 1 }
 0x923   :  { %1705 = vsyncpa [#allocation6], 1 }

</bundles_post_ra>
